<compile_context>
chip_gen: v6e
topology: v6e:2x2x1
jax: 0.10.0
libtpu: 0.0.40
codegen_flags: <defaults>
</compile_context>

<pallas_src>
import functools
import math

import jax
import jax.numpy as jnp
import numpy as np
from jax.experimental import pallas as pl
from jax.experimental.pallas import tpu as pltpu  # noqa: F401  (for the future tiled variant)

KERNEL = 8                 # Demucs-style conv kernel
STRIDE = 4                 # Demucs-style conv stride
DEPTH = 2                  # encoder / decoder depth
C1, C2 = 16, 32            # encoder channel widths
VIS = 32                   # visual_feature_size
OUT_BLK = STRIDE * STRIDE  # 16 output samples packed per output row
WIN = KERNEL + STRIDE * (STRIDE - 1)   # 20 audio samples per level-1 block
SLAB_W = 128               # lane width of the packed weight / bias slabs
ACT_W = 32                 # lane width of the packed activation slab

# The "two shifted matmuls" block decomposition relies on this.
assert KERNEL == 2 * STRIDE


def sound_valid_length(length):
    """Demucs-style nearest valid input length (same math as the PyTorch model)."""
    for _ in range(DEPTH):
        length = math.ceil((length - KERNEL) / STRIDE) + 1
        length = max(length, 1)
    for _ in range(DEPTH):
        length = (length - 1) * STRIDE + KERNEL
    return int(length)


# ----------------------------------------------------------------------------
# Operand packing helpers: everything matmul-able goes into one bf16 slab,
# every bias row goes into one f32 slab; the kernel slices them at static,
# tile-aligned row offsets (one DMA per slab instead of one per tensor).
# ----------------------------------------------------------------------------
class _SlabPacker:
    def __init__(self, width, row_align):
        self.width = width
        self.row_align = row_align
        self._rows = 0
        self._chunks = []
        self.offsets = {}

    def add(self, name, arr):
        arr = jnp.asarray(arr, jnp.float32)
        if arr.ndim == 1:
            arr = arr[None, :]
        r, c = arr.shape
        assert c <= self.width, (name, arr.shape)
        rpad = (-r) % self.row_align
        self.offsets[name] = (self._rows, r, c)
        self._chunks.append(jnp.pad(arr, ((0, rpad), (0, self.width - c))))
        self._rows += r + rpad

    def finish(self, dtype):
        return jnp.concatenate(self._chunks, axis=0).astype(dtype), self.offsets


def pack_params(p, l2, n1b, nob, trim):
    """PyTorch-shaped params -> (bf16 matmul slab, f32 bias slab) + offsets."""
    wp = _SlabPacker(SLAB_W, row_align=16)   # bf16 tile = (16, 128)
    bp = _SlabPacker(SLAB_W, row_align=8)    # f32 tile  = (8, 128)

    # --- vision surrogate ---------------------------------------------------
    wp.add("v_w1", p["v_w1"]); bp.add("v_b1", p["v_b1"])
    wp.add("v_w2", p["v_w2"]); bp.add("v_b2", p["v_b2"])

    # --- encoder layer 1: banded weight acting on 20-sample audio windows ---
    m = np.zeros((WIN, STRIDE, KERNEL), np.float32)
    for s in range(WIN):
        for pp in range(STRIDE):
            k = s - STRIDE * pp
            if 0 <= k < KERNEL:
                m[s, pp, k] = 1.0
    bw = jnp.einsum("spk,kc->spc", m, p["e1_w"]).reshape(WIN, STRIDE * C1)
    wp.add("e1_w", bw)
    bp.add("e1_b", jnp.tile(p["e1_b"], STRIDE))

    # level-1 GLU: block-diagonal over the 4 time positions of a block
    wv, wg = p["e1g_w"][:, :C1], p["e1g_w"][:, C1:]
    wp.add("e1g_wv", jnp.kron(jnp.eye(STRIDE), wv))
    wp.add("e1g_wg", jnp.kron(jnp.eye(STRIDE), wg))
    bp.add("e1g_bv", jnp.tile(p["e1g_b"][:C1], STRIDE))
    bp.add("e1g_bg", jnp.tile(p["e1g_b"][C1:], STRIDE))

    # --- encoder layer 2: two half-kernel weights on (4*C1) block rows ------
    wp.add("e2_w0", p["e2_w"][: STRIDE * C1])
    wp.add("e2_w1", p["e2_w"][STRIDE * C1:])
    bp.add("e2_b", p["e2_b"])
    wp.add("e2g_wv", p["e2g_w"][:, :C2]); wp.add("e2g_wg", p["e2g_w"][:, C2:])
    bp.add("e2g_bv", p["e2g_b"][:C2]);    bp.add("e2g_bg", p["e2g_b"][C2:])

    # --- bottleneck visual fusion (split weight + broadcast add) ------------
    wp.add("fuse_we", p["fuse_w"][:C2]); wp.add("fuse_wv", p["fuse_w"][C2:])
    bp.add("fuse_b", p["fuse_b"])

    # --- decoder layer 2: GLU + transposed conv (block overlap-add) ---------
    wp.add("d2g_wv", p["d2g_w"][:, :C2]); wp.add("d2g_wg", p["d2g_w"][:, C2:])
    bp.add("d2g_bv", p["d2g_b"][:C2]);    bp.add("d2g_bg", p["d2g_b"][C2:])
    w3 = p["d2t_w"].reshape(C2, KERNEL, C1)
    wp.add("d2t_w0", w3[:, :STRIDE, :].reshape(C2, STRIDE * C1))
    wp.add("d2t_w1", w3[:, STRIDE:, :].reshape(C2, STRIDE * C1))
    bp.add("d2t_b", jnp.tile(p["d2t_b"], STRIDE))
    wp.add("sel_d2_0", jnp.eye(n1b, l2))          # place contribution from x[b]
    wp.add("sel_d2_1", jnp.eye(n1b, l2, k=-1))    # place contribution from x[b-1]

    # --- decoder layer 1: GLU + transposed conv with fused center trim ------
    wv, wg = p["d1g_w"][:, :C1], p["d1g_w"][:, C1:]
    wp.add("d1g_wv", jnp.kron(jnp.eye(STRIDE), wv))
    wp.add("d1g_wg", jnp.kron(jnp.eye(STRIDE), wg))
    bp.add("d1g_bv", jnp.tile(p["d1g_b"][:C1], STRIDE))
    bp.add("d1g_bg", jnp.tile(p["d1g_b"][C1:], STRIDE))
    w3 = p["d1t_w"].reshape(C1, KERNEL, 2)
    for name, d in (("d1t_cm", -1), ("d1t_c0", 0), ("d1t_cp", 1)):
        m = np.zeros((STRIDE, KERNEL, OUT_BLK), np.float32)
        for pp in range(STRIDE):
            for s in range(OUT_BLK):
                k = s + trim - OUT_BLK * d - STRIDE * pp
                if 0 <= k < KERNEL:
                    m[pp, k, s] = 1.0
        cd = jnp.einsum("pks,iko->piso", m, w3).reshape(STRIDE * C1, OUT_BLK * 2)
        wp.add(name, cd)
    # with this trim, blocks further than +-1 away contribute nothing
    for d in (-2, 2):
        for pp in range(STRIDE):
            for s in range(OUT_BLK):
                k = s + trim - OUT_BLK * d - STRIDE * pp
                assert not (0 <= k < KERNEL), "center trim needs wider block overlap"
    bp.add("d1t_b", jnp.tile(p["d1t_b"], OUT_BLK))
    wp.add("sel_o_m", jnp.eye(nob, n1b, k=-1))
    wp.add("sel_o_0", jnp.eye(nob, n1b, k=0))
    wp.add("sel_o_p", jnp.eye(nob, n1b, k=1))

    wslab, woffs = wp.finish(jnp.bfloat16)
    bslab, boffs = bp.finish(jnp.float32)
    return wslab, woffs, bslab, boffs


# ----------------------------------------------------------------------------
# The fused Pallas kernel: the whole NetWrapper forward in a single dispatch.
# Activations carry time packed 4-wide into lanes: (T/4, 4*C) "block rows".
# ----------------------------------------------------------------------------
def _fused_forward_kernel(act_ref, w_ref, b_ref, out_ref, *, woffs, boffs, dims):
    f32, bf16 = jnp.float32, jnp.bfloat16
    npts, nfeat = dims["npts"], dims["nfeat"]
    a_row0, n1b, l2 = dims["a_row0"], dims["n1b"], dims["l2"]

    def W(name):                       # bf16 matmul operand (static slab slice)
        r0, r, c = woffs[name]
        return w_ref[r0:r0 + r, :c]

    def B(name):                       # f32 (1, c) bias row
        r0, r, c = boffs[name]
        return b_ref[r0:r0 + r, :c]

    def mm(a, b):                      # bf16 MXU operands, f32 accumulation
        return jnp.dot(a.astype(bf16), b.astype(bf16), preferred_element_type=f32)

    def relu(x):
        return jnp.maximum(x, 0.0)

    def glu(x, tag):                   # split-weight GLU (no lane split/concat)
        val = mm(x, W(tag + "_wv")) + B(tag + "_bv")
        gate = mm(x, W(tag + "_wg")) + B(tag + "_bg")
        return val * jax.nn.sigmoid(gate)

    # --- net_vision surrogate: per-point MLP + global max pool -> (1, VIS) ---
    feats = act_ref[0:npts, 0:nfeat]
    h = relu(mm(feats, W("v_w1")) + B("v_b1"))
    h = mm(h, W("v_w2")) + B("v_b2")
    vfeat = jnp.max(h, axis=0, keepdims=True)

    # --- encoder layer 1: banded matmul on 20-sample windows -> block layout -
    xwin = act_ref[a_row0:a_row0 + n1b, 0:WIN]          # (n1b, 20)
    e1 = relu(mm(xwin, W("e1_w")) + B("e1_b"))          # (n1b, 4*C1)
    e1 = glu(e1, "e1g")

    # --- encoder layer 2: two shifted half-kernel matmuls ---------------------
    t0 = mm(e1, W("e2_w0"))                             # (n1b, C2)
    t1 = mm(e1, W("e2_w1"))
    e2 = relu(t0[:l2, :] + t1[1:l2 + 1, :] + B("e2_b")) # (l2, C2)
    e2 = glu(e2, "e2g")

    # --- visual fusion: split weight + broadcast add (no tile / concat) -------
    z = relu(mm(e2, W("fuse_we")) + mm(vfeat, W("fuse_wv")) + B("fuse_b"))

    # --- decoder layer 2: skip + GLU + transposed conv (block overlap-add) ----
    d2 = glu(z + e2, "d2g")                             # (l2, C2)
    u0 = mm(d2, W("d2t_w0"))                            # (l2, 4*C1)
    u1 = mm(d2, W("d2t_w1"))
    d2b = relu(mm(W("sel_d2_0"), u0) + mm(W("sel_d2_1"), u1) + B("d2t_b"))

    # --- decoder layer 1: skip + GLU + transposed conv + fused center trim ----
    d1 = glu(d2b + e1, "d1g")                           # (n1b, 4*C1)
    w0 = mm(d1, W("d1t_c0"))                            # (n1b, 2*OUT_BLK)
    wm = mm(d1, W("d1t_cm"))
    wp_ = mm(d1, W("d1t_cp"))
    out_ref[...] = (mm(W("sel_o_0"), w0) + mm(W("sel_o_m"), wm)
                    + mm(W("sel_o_p"), wp_) + B("d1t_b"))


# ----------------------------------------------------------------------------
# NetWrapper.forward equivalent.
# ----------------------------------------------------------------------------
@functools.partial(jax.jit, static_argnums=(4,))
def netwrapper_forward(params, in_audio, feats, coords, aud_len):
    # TODO(synk): coords feed the MinkowskiEngine sparse tensor; unused by the
    # dense PointNet-style surrogate of net_vision.
    del coords

    vlen = sound_valid_length(aud_len)
    delta = vlen - aud_len
    trim = delta // 2
    l1 = (vlen - KERNEL) // STRIDE + 1
    l2 = (l1 - KERNEL) // STRIDE + 1
    assert l1 % STRIDE == 0 and aud_len % OUT_BLK == 0
    n1b = l1 // STRIDE
    nob = aud_len // OUT_BLK
    assert n1b == l2 + 1

    # pad and window the mono audio into overlapping 20-sample rows (free XLA)
    padded = jnp.pad(in_audio, ((0, 0), (trim, delta - trim)))[0]          # (vlen,)
    idx = jnp.arange(n1b)[:, None] * OUT_BLK + jnp.arange(WIN)[None, :]
    win = padded[idx]                                                       # (n1b, 20)

    # one f32 activation slab: point features + audio windows
    npts, nfeat = feats.shape
    a_row0 = ((npts + 7) // 8) * 8
    act = jnp.zeros((a_row0 + n1b, ACT_W), jnp.float32)
    act = act.at[:npts, :nfeat].set(feats)
    act = act.at[a_row0:a_row0 + n1b, :WIN].set(win)

    # one bf16 matmul slab + one f32 bias slab
    wslab, woffs, bslab, boffs = pack_params(params, l2, n1b, nob, trim)

    dims = dict(npts=npts, nfeat=nfeat, a_row0=a_row0, n1b=n1b, l2=l2)
    kernel = functools.partial(_fused_forward_kernel,
                               woffs=woffs, boffs=boffs, dims=dims)

    bytes_accessed = int(act.size * 4 + wslab.size * 2 + bslab.size * 4
                         + nob * 2 * OUT_BLK * 4)
    out_blocks = pl.pallas_call(
        kernel,
        out_shape=jax.ShapeDtypeStruct((nob, 2 * OUT_BLK), jnp.float32),
        cost_estimate=pl.CostEstimate(flops=1_600_000, transcendentals=3_200,
                                      bytes_accessed=bytes_accessed),
    )(act, wslab, bslab)

    # lane-packed blocks -> (aud_len, 2) waveform (free wrapper reshape)
    return out_blocks.reshape(nob, OUT_BLK, 2).reshape(aud_len, 2)


# ----------------------------------------------------------------------------
# Pure-JAX reference (original im2col / scatter-add formulation) for checking.
# ----------------------------------------------------------------------------
def reference_forward(params, in_audio, feats, aud_len):
    relu = lambda x: jnp.maximum(x, 0.0)

    def glu(x, w, b):
        a = x @ w + b
        n = a.shape[-1] // 2
        return a[:, :n] * jax.nn.sigmoid(a[:, n:])

    def conv1d(x, w, b):
        t, c = x.shape
        l_out = (t - KERNEL) // STRIDE + 1
        idx = jnp.arange(l_out)[:, None] * STRIDE + jnp.arange(KERNEL)[None, :]
        patches = x[idx].reshape(l_out, KERNEL * c)
        return relu(patches @ w + b)

    def conv_transpose1d(x, w, b, act):
        l_in, _ = x.shape
        c_out = w.shape[1] // KERNEL
        cols = (x @ w).reshape(l_in, KERNEL, c_out)
        l_out = (l_in - 1) * STRIDE + KERNEL
        out = jnp.zeros((l_out, c_out), jnp.float32)
        for k0 in range(0, KERNEL, STRIDE):
            seg = cols[:, k0:k0 + STRIDE, :].reshape(l_in * STRIDE, c_out)
            out = out.at[k0:k0 + l_in * STRIDE].add(seg)
        out = out + b[None, :]
        return relu(out) if act == "relu" else out

    # vision surrogate
    h = relu(feats @ params["v_w1"] + params["v_b1"])
    h = h @ params["v_w2"] + params["v_b2"]
    vfeat = jnp.max(h, axis=0)

    # pad / encode / fuse / decode
    vlen = sound_valid_length(aud_len)
    delta = vlen - aud_len
    x = jnp.pad(in_audio, ((0, 0), (delta // 2, delta - delta // 2)))[0][:, None]
    e1 = conv1d(x, params["e1_w"], params["e1_b"])
    e1 = glu(e1, params["e1g_w"], params["e1g_b"])
    e2 = conv1d(e1, params["e2_w"], params["e2_b"])
    e2 = glu(e2, params["e2g_w"], params["e2g_b"])
    vtile = jnp.tile(vfeat[None, :], (e2.shape[0], 1))
    z = relu(jnp.concatenate([e2, vtile], axis=-1) @ params["fuse_w"] + params["fuse_b"])
    d2 = glu(z + e2, params["d2g_w"], params["d2g_b"])
    d2 = conv_transpose1d(d2, params["d2t_w"], params["d2t_b"], "relu")
    d1 = glu(d2 + e1, params["d1g_w"], params["d1g_b"])
    d1 = conv_transpose1d(d1, params["d1t_w"], params["d1t_b"], "none")
    delta = d1.shape[0] - aud_len
    return d1[delta // 2: d1.shape[0] - (delta - delta // 2), :]   # (aud_len, 2)


# ----------------------------------------------------------------------------
# Deterministic parameter init (PyTorch-style layouts).
# ----------------------------------------------------------------------------
def init_params(key):
    ks = iter(jax.random.split(key, 32))

    def w(shape, scale=0.1):
        return scale * jax.random.normal(next(ks), shape, jnp.float32)

    def b(n, scale=0.05):
        return scale * jax.random.normal(next(ks), (n,), jnp.float32)

    return {
        # vision MLP surrogate
        "v_w1": w((3, 64)), "v_b1": b(64),
        "v_w2": w((64, VIS)), "v_b2": b(VIS),
        # encoder
        "e1_w": w((KERNEL * 1, C1)), "e1_b": b(C1),
        "e1g_w": w((C1, 2 * C1)), "e1g_b": b(2 * C1),
        "e2_w": w((KERNEL * C1, C2)), "e2_b": b(C2),
        "e2g_w": w((C2, 2 * C2)), "e2g_b": b(2 * C2),
        # bottleneck visual fusion
        "fuse_w": w((C2 + VIS, C2)), "fuse_b": b(C2),
        # decoder
        "d2g_w": w((C2, 2 * C2)), "d2g_b": b(2 * C2),
        "d2t_w": w((C2, KERNEL * C1)), "d2t_b": b(C1),
        "d1g_w": w((C1, 2 * C1)), "d1g_b": b(2 * C1),
        "d1t_w": w((C1, KERNEL * 2)), "d1t_b": b(2),
    }


if __name__ == "__main__":
    key = jax.random.PRNGKey(0)
    kp, ka, kf, kc = jax.random.split(key, 4)

    aud_len = 256
    params = init_params(kp)
    in_audio = jax.random.normal(ka, (1, aud_len), jnp.float32)        # mono waveform
    feats = jax.random.normal(kf, (64, 3), jnp.float32)                # per-point feats
    coords = jax.random.randint(kc, (64, 3), 0, 32).astype(jnp.int32)  # voxel coords

    out = netwrapper_forward(params, in_audio, feats, coords, aud_len)
    out = jax.block_until_ready(out)

    assert out.shape == (aud_len, 2), out.shape
    assert out.dtype == jnp.float32
    assert bool(jnp.all(jnp.isfinite(out)))

    # Cross-check the fused bf16-MXU kernel against a plain-JAX f32 reference.
    ref = reference_forward(params, in_audio, feats, aud_len)
    max_err = float(jnp.max(jnp.abs(out - ref)))
    assert max_err < 1e-2, max_err

    print("KERNEL_OK")
</pallas_src>

<mosaic_0001>
module attributes {stable_mosaic.version = 11 : i64} {
  func.func @_fused_forward_kernel(%arg0: memref<80x32xf32, #tpu.memory_space<vmem>>, %arg1: memref<1024x128xbf16, #tpu.memory_space<vmem>>, %arg2: memref<120x128xf32, #tpu.memory_space<vmem>>, %arg3: memref<16x32xf32, #tpu.memory_space<vmem>>) attributes {dimension_semantics = [], scalar_prefetch = 0 : i64, scratch_operands = 0 : i64, tpu.core_type = #tpu.core_type<tc>} {
    %c0 = arith.constant 0 : index
    %c0_0 = arith.constant 0 : index
    %0 = vector.load %arg0[%c0, %c0_0] : memref<80x32xf32, #tpu.memory_space<vmem>>, vector<64x3xf32>
    %c0_1 = arith.constant 0 : index
    %c0_2 = arith.constant 0 : index
    %1 = vector.load %arg1[%c0_1, %c0_2] : memref<1024x128xbf16, #tpu.memory_space<vmem>>, vector<3x64xbf16>
    %2 = arith.truncf %0 : vector<64x3xf32> to vector<64x3xbf16>
    %cst = arith.constant dense<0.000000e+00> : vector<64x64xf32>
    %3 = tpu.matmul %2, %1, %cst {dimension_numbers = #tpu.dot_dimension_numbers<[1], [0], [0], [1], [0, 0, 1, 1], [], []>} : vector<64x3xbf16>, vector<3x64xbf16>, vector<64x64xf32> -> vector<64x64xf32>
    %c0_3 = arith.constant 0 : index
    %c0_4 = arith.constant 0 : index
    %4 = vector.load %arg2[%c0_3, %c0_4] : memref<120x128xf32, #tpu.memory_space<vmem>>, vector<1x64xf32>
    %5 = vector.broadcast %4 : vector<1x64xf32> to vector<64x64xf32>
    %6 = arith.addf %3, %5 : vector<64x64xf32>
    %cst_5 = arith.constant 0.000000e+00 : f32
    %7 = vector.broadcast %cst_5 : f32 to vector<64x64xf32>
    %8 = arith.maximumf %6, %7 : vector<64x64xf32>
    %c16 = arith.constant 16 : index
    %c0_6 = arith.constant 0 : index
    %9 = vector.load %arg1[%c16, %c0_6] : memref<1024x128xbf16, #tpu.memory_space<vmem>>, vector<64x32xbf16>
    %10 = arith.truncf %8 : vector<64x64xf32> to vector<64x64xbf16>
    %cst_7 = arith.constant dense<0.000000e+00> : vector<64x32xf32>
    %11 = tpu.matmul %10, %9, %cst_7 {dimension_numbers = #tpu.dot_dimension_numbers<[1], [0], [0], [1], [0, 0, 1, 1], [], []>} : vector<64x64xbf16>, vector<64x32xbf16>, vector<64x32xf32> -> vector<64x32xf32>
    %c8 = arith.constant 8 : index
    %c0_8 = arith.constant 0 : index
    %12 = vector.load %arg2[%c8, %c0_8] : memref<120x128xf32, #tpu.memory_space<vmem>>, vector<1x32xf32>
    %13 = vector.broadcast %12 : vector<1x32xf32> to vector<64x32xf32>
    %14 = arith.addf %11, %13 : vector<64x32xf32>
    %cst_9 = arith.constant dense<0xFF800000> : vector<32xf32>
    %15 = vector.multi_reduction <maximumf>, %14, %cst_9 [0] : vector<64x32xf32> to vector<32xf32>
    %16 = vector.shape_cast %15 : vector<32xf32> to vector<1x32xf32>
    %c64 = arith.constant 64 : index
    %c0_10 = arith.constant 0 : index
    %17 = vector.load %arg0[%c64, %c0_10] : memref<80x32xf32, #tpu.memory_space<vmem>>, vector<16x20xf32>
    %c80 = arith.constant 80 : index
    %c0_11 = arith.constant 0 : index
    %18 = vector.load %arg1[%c80, %c0_11] : memref<1024x128xbf16, #tpu.memory_space<vmem>>, vector<20x64xbf16>
    %19 = arith.truncf %17 : vector<16x20xf32> to vector<16x20xbf16>
    %cst_12 = arith.constant dense<0.000000e+00> : vector<16x64xf32>
    %20 = tpu.matmul %19, %18, %cst_12 {dimension_numbers = #tpu.dot_dimension_numbers<[1], [0], [0], [1], [0, 0, 1, 1], [], []>} : vector<16x20xbf16>, vector<20x64xbf16>, vector<16x64xf32> -> vector<16x64xf32>
    %c16_13 = arith.constant 16 : index
    %c0_14 = arith.constant 0 : index
    %21 = vector.load %arg2[%c16_13, %c0_14] : memref<120x128xf32, #tpu.memory_space<vmem>>, vector<1x64xf32>
    %22 = vector.broadcast %21 : vector<1x64xf32> to vector<16x64xf32>
    %23 = arith.addf %20, %22 : vector<16x64xf32>
    %cst_15 = arith.constant 0.000000e+00 : f32
    %24 = vector.broadcast %cst_15 : f32 to vector<16x64xf32>
    %25 = arith.maximumf %23, %24 : vector<16x64xf32>
    %c112 = arith.constant 112 : index
    %c0_16 = arith.constant 0 : index
    %26 = vector.load %arg1[%c112, %c0_16] : memref<1024x128xbf16, #tpu.memory_space<vmem>>, vector<64x64xbf16>
    %27 = arith.truncf %25 : vector<16x64xf32> to vector<16x64xbf16>
    %cst_17 = arith.constant dense<0.000000e+00> : vector<16x64xf32>
    %28 = tpu.matmul %27, %26, %cst_17 {dimension_numbers = #tpu.dot_dimension_numbers<[1], [0], [0], [1], [0, 0, 1, 1], [], []>} : vector<16x64xbf16>, vector<64x64xbf16>, vector<16x64xf32> -> vector<16x64xf32>
    %c24 = arith.constant 24 : index
    %c0_18 = arith.constant 0 : index
    %29 = vector.load %arg2[%c24, %c0_18] : memref<120x128xf32, #tpu.memory_space<vmem>>, vector<1x64xf32>
    %30 = vector.broadcast %29 : vector<1x64xf32> to vector<16x64xf32>
    %31 = arith.addf %28, %30 : vector<16x64xf32>
    %c176 = arith.constant 176 : index
    %c0_19 = arith.constant 0 : index
    %32 = vector.load %arg1[%c176, %c0_19] : memref<1024x128xbf16, #tpu.memory_space<vmem>>, vector<64x64xbf16>
    %33 = arith.truncf %25 : vector<16x64xf32> to vector<16x64xbf16>
    %cst_20 = arith.constant dense<0.000000e+00> : vector<16x64xf32>
    %34 = tpu.matmul %33, %32, %cst_20 {dimension_numbers = #tpu.dot_dimension_numbers<[1], [0], [0], [1], [0, 0, 1, 1], [], []>} : vector<16x64xbf16>, vector<64x64xbf16>, vector<16x64xf32> -> vector<16x64xf32>
    %c32 = arith.constant 32 : index
    %c0_21 = arith.constant 0 : index
    %35 = vector.load %arg2[%c32, %c0_21] : memref<120x128xf32, #tpu.memory_space<vmem>>, vector<1x64xf32>
    %36 = vector.broadcast %35 : vector<1x64xf32> to vector<16x64xf32>
    %37 = arith.addf %34, %36 : vector<16x64xf32>
    %38 = arith.negf %37 : vector<16x64xf32>
    %39 = math.exp %38 : vector<16x64xf32>
    %cst_22 = arith.constant 1.000000e+00 : f32
    %40 = vector.broadcast %cst_22 : f32 to vector<16x64xf32>
    %41 = arith.addf %40, %39 : vector<16x64xf32>
    %42 = arith.divf %40, %41 : vector<16x64xf32>
    %43 = arith.mulf %31, %42 : vector<16x64xf32>
    %c240 = arith.constant 240 : index
    %c0_23 = arith.constant 0 : index
    %44 = vector.load %arg1[%c240, %c0_23] : memref<1024x128xbf16, #tpu.memory_space<vmem>>, vector<64x32xbf16>
    %45 = arith.truncf %43 : vector<16x64xf32> to vector<16x64xbf16>
    %cst_24 = arith.constant dense<0.000000e+00> : vector<16x32xf32>
    %46 = tpu.matmul %45, %44, %cst_24 {dimension_numbers = #tpu.dot_dimension_numbers<[1], [0], [0], [1], [0, 0, 1, 1], [], []>} : vector<16x64xbf16>, vector<64x32xbf16>, vector<16x32xf32> -> vector<16x32xf32>
    %c304 = arith.constant 304 : index
    %c0_25 = arith.constant 0 : index
    %47 = vector.load %arg1[%c304, %c0_25] : memref<1024x128xbf16, #tpu.memory_space<vmem>>, vector<64x32xbf16>
    %48 = arith.truncf %43 : vector<16x64xf32> to vector<16x64xbf16>
    %cst_26 = arith.constant dense<0.000000e+00> : vector<16x32xf32>
    %49 = tpu.matmul %48, %47, %cst_26 {dimension_numbers = #tpu.dot_dimension_numbers<[1], [0], [0], [1], [0, 0, 1, 1], [], []>} : vector<16x64xbf16>, vector<64x32xbf16>, vector<16x32xf32> -> vector<16x32xf32>
    %50 = vector.extract_strided_slice %46 {offsets = [0, 0], sizes = [15, 32], strides = [1, 1]} : vector<16x32xf32> to vector<15x32xf32>
    %51 = vector.extract_strided_slice %49 {offsets = [1, 0], sizes = [15, 32], strides = [1, 1]} : vector<16x32xf32> to vector<15x32xf32>
    %52 = arith.addf %50, %51 : vector<15x32xf32>
    %c40 = arith.constant 40 : index
    %c0_27 = arith.constant 0 : index
    %53 = vector.load %arg2[%c40, %c0_27] : memref<120x128xf32, #tpu.memory_space<vmem>>, vector<1x32xf32>
    %54 = vector.broadcast %53 : vector<1x32xf32> to vector<15x32xf32>
    %55 = arith.addf %52, %54 : vector<15x32xf32>
    %cst_28 = arith.constant 0.000000e+00 : f32
    %56 = vector.broadcast %cst_28 : f32 to vector<15x32xf32>
    %57 = arith.maximumf %55, %56 : vector<15x32xf32>
    %c368 = arith.constant 368 : index
    %c0_29 = arith.constant 0 : index
    %58 = vector.load %arg1[%c368, %c0_29] : memref<1024x128xbf16, #tpu.memory_space<vmem>>, vector<32x32xbf16>
    %59 = arith.truncf %57 : vector<15x32xf32> to vector<15x32xbf16>
    %cst_30 = arith.constant dense<0.000000e+00> : vector<15x32xf32>
    %60 = tpu.matmul %59, %58, %cst_30 {dimension_numbers = #tpu.dot_dimension_numbers<[1], [0], [0], [1], [0, 0, 1, 1], [], []>} : vector<15x32xbf16>, vector<32x32xbf16>, vector<15x32xf32> -> vector<15x32xf32>
    %c48 = arith.constant 48 : index
    %c0_31 = arith.constant 0 : index
    %61 = vector.load %arg2[%c48, %c0_31] : memref<120x128xf32, #tpu.memory_space<vmem>>, vector<1x32xf32>
    %62 = vector.broadcast %61 : vector<1x32xf32> to vector<15x32xf32>
    %63 = arith.addf %60, %62 : vector<15x32xf32>
    %c400 = arith.constant 400 : index
    %c0_32 = arith.constant 0 : index
    %64 = vector.load %arg1[%c400, %c0_32] : memref<1024x128xbf16, #tpu.memory_space<vmem>>, vector<32x32xbf16>
    %65 = arith.truncf %57 : vector<15x32xf32> to vector<15x32xbf16>
    %cst_33 = arith.constant dense<0.000000e+00> : vector<15x32xf32>
    %66 = tpu.matmul %65, %64, %cst_33 {dimension_numbers = #tpu.dot_dimension_numbers<[1], [0], [0], [1], [0, 0, 1, 1], [], []>} : vector<15x32xbf16>, vector<32x32xbf16>, vector<15x32xf32> -> vector<15x32xf32>
    %c56 = arith.constant 56 : index
    %c0_34 = arith.constant 0 : index
    %67 = vector.load %arg2[%c56, %c0_34] : memref<120x128xf32, #tpu.memory_space<vmem>>, vector<1x32xf32>
    %68 = vector.broadcast %67 : vector<1x32xf32> to vector<15x32xf32>
    %69 = arith.addf %66, %68 : vector<15x32xf32>
    %70 = arith.negf %69 : vector<15x32xf32>
    %71 = math.exp %70 : vector<15x32xf32>
    %cst_35 = arith.constant 1.000000e+00 : f32
    %72 = vector.broadcast %cst_35 : f32 to vector<15x32xf32>
    %73 = arith.addf %72, %71 : vector<15x32xf32>
    %74 = arith.divf %72, %73 : vector<15x32xf32>
    %75 = arith.mulf %63, %74 : vector<15x32xf32>
    %c432 = arith.constant 432 : index
    %c0_36 = arith.constant 0 : index
    %76 = vector.load %arg1[%c432, %c0_36] : memref<1024x128xbf16, #tpu.memory_space<vmem>>, vector<32x32xbf16>
    %77 = arith.truncf %75 : vector<15x32xf32> to vector<15x32xbf16>
    %cst_37 = arith.constant dense<0.000000e+00> : vector<15x32xf32>
    %78 = tpu.matmul %77, %76, %cst_37 {dimension_numbers = #tpu.dot_dimension_numbers<[1], [0], [0], [1], [0, 0, 1, 1], [], []>} : vector<15x32xbf16>, vector<32x32xbf16>, vector<15x32xf32> -> vector<15x32xf32>
    %c464 = arith.constant 464 : index
    %c0_38 = arith.constant 0 : index
    %79 = vector.load %arg1[%c464, %c0_38] : memref<1024x128xbf16, #tpu.memory_space<vmem>>, vector<32x32xbf16>
    %80 = arith.truncf %16 : vector<1x32xf32> to vector<1x32xbf16>
    %cst_39 = arith.constant dense<0.000000e+00> : vector<1x32xf32>
    %81 = tpu.matmul %80, %79, %cst_39 {dimension_numbers = #tpu.dot_dimension_numbers<[1], [0], [0], [1], [0, 0, 1, 1], [], []>} : vector<1x32xbf16>, vector<32x32xbf16>, vector<1x32xf32> -> vector<1x32xf32>
    %82 = vector.broadcast %81 : vector<1x32xf32> to vector<15x32xf32>
    %83 = arith.addf %78, %82 : vector<15x32xf32>
    %c64_40 = arith.constant 64 : index
    %c0_41 = arith.constant 0 : index
    %84 = vector.load %arg2[%c64_40, %c0_41] : memref<120x128xf32, #tpu.memory_space<vmem>>, vector<1x32xf32>
    %85 = vector.broadcast %84 : vector<1x32xf32> to vector<15x32xf32>
    %86 = arith.addf %83, %85 : vector<15x32xf32>
    %cst_42 = arith.constant 0.000000e+00 : f32
    %87 = vector.broadcast %cst_42 : f32 to vector<15x32xf32>
    %88 = arith.maximumf %86, %87 : vector<15x32xf32>
    %89 = arith.addf %88, %75 : vector<15x32xf32>
    %c496 = arith.constant 496 : index
    %c0_43 = arith.constant 0 : index
    %90 = vector.load %arg1[%c496, %c0_43] : memref<1024x128xbf16, #tpu.memory_space<vmem>>, vector<32x32xbf16>
    %91 = arith.truncf %89 : vector<15x32xf32> to vector<15x32xbf16>
    %cst_44 = arith.constant dense<0.000000e+00> : vector<15x32xf32>
    %92 = tpu.matmul %91, %90, %cst_44 {dimension_numbers = #tpu.dot_dimension_numbers<[1], [0], [0], [1], [0, 0, 1, 1], [], []>} : vector<15x32xbf16>, vector<32x32xbf16>, vector<15x32xf32> -> vector<15x32xf32>
    %c72 = arith.constant 72 : index
    %c0_45 = arith.constant 0 : index
    %93 = vector.load %arg2[%c72, %c0_45] : memref<120x128xf32, #tpu.memory_space<vmem>>, vector<1x32xf32>
    %94 = vector.broadcast %93 : vector<1x32xf32> to vector<15x32xf32>
    %95 = arith.addf %92, %94 : vector<15x32xf32>
    %c528 = arith.constant 528 : index
    %c0_46 = arith.constant 0 : index
    %96 = vector.load %arg1[%c528, %c0_46] : memref<1024x128xbf16, #tpu.memory_space<vmem>>, vector<32x32xbf16>
    %97 = arith.truncf %89 : vector<15x32xf32> to vector<15x32xbf16>
    %cst_47 = arith.constant dense<0.000000e+00> : vector<15x32xf32>
    %98 = tpu.matmul %97, %96, %cst_47 {dimension_numbers = #tpu.dot_dimension_numbers<[1], [0], [0], [1], [0, 0, 1, 1], [], []>} : vector<15x32xbf16>, vector<32x32xbf16>, vector<15x32xf32> -> vector<15x32xf32>
    %c80_48 = arith.constant 80 : index
    %c0_49 = arith.constant 0 : index
    %99 = vector.load %arg2[%c80_48, %c0_49] : memref<120x128xf32, #tpu.memory_space<vmem>>, vector<1x32xf32>
    %100 = vector.broadcast %99 : vector<1x32xf32> to vector<15x32xf32>
    %101 = arith.addf %98, %100 : vector<15x32xf32>
    %102 = arith.negf %101 : vector<15x32xf32>
    %103 = math.exp %102 : vector<15x32xf32>
    %cst_50 = arith.constant 1.000000e+00 : f32
    %104 = vector.broadcast %cst_50 : f32 to vector<15x32xf32>
    %105 = arith.addf %104, %103 : vector<15x32xf32>
    %106 = arith.divf %104, %105 : vector<15x32xf32>
    %107 = arith.mulf %95, %106 : vector<15x32xf32>
    %c560 = arith.constant 560 : index
    %c0_51 = arith.constant 0 : index
    %108 = vector.load %arg1[%c560, %c0_51] : memref<1024x128xbf16, #tpu.memory_space<vmem>>, vector<32x64xbf16>
    %109 = arith.truncf %107 : vector<15x32xf32> to vector<15x32xbf16>
    %cst_52 = arith.constant dense<0.000000e+00> : vector<15x64xf32>
    %110 = tpu.matmul %109, %108, %cst_52 {dimension_numbers = #tpu.dot_dimension_numbers<[1], [0], [0], [1], [0, 0, 1, 1], [], []>} : vector<15x32xbf16>, vector<32x64xbf16>, vector<15x64xf32> -> vector<15x64xf32>
    %c592 = arith.constant 592 : index
    %c0_53 = arith.constant 0 : index
    %111 = vector.load %arg1[%c592, %c0_53] : memref<1024x128xbf16, #tpu.memory_space<vmem>>, vector<32x64xbf16>
    %112 = arith.truncf %107 : vector<15x32xf32> to vector<15x32xbf16>
    %cst_54 = arith.constant dense<0.000000e+00> : vector<15x64xf32>
    %113 = tpu.matmul %112, %111, %cst_54 {dimension_numbers = #tpu.dot_dimension_numbers<[1], [0], [0], [1], [0, 0, 1, 1], [], []>} : vector<15x32xbf16>, vector<32x64xbf16>, vector<15x64xf32> -> vector<15x64xf32>
    %c624 = arith.constant 624 : index
    %c0_55 = arith.constant 0 : index
    %114 = vector.load %arg1[%c624, %c0_55] : memref<1024x128xbf16, #tpu.memory_space<vmem>>, vector<16x15xbf16>
    %115 = arith.truncf %110 : vector<15x64xf32> to vector<15x64xbf16>
    %cst_56 = arith.constant dense<0.000000e+00> : vector<16x64xf32>
    %116 = tpu.matmul %114, %115, %cst_56 {dimension_numbers = #tpu.dot_dimension_numbers<[1], [0], [0], [1], [0, 0, 1, 1], [], []>} : vector<16x15xbf16>, vector<15x64xbf16>, vector<16x64xf32> -> vector<16x64xf32>
    %c640 = arith.constant 640 : index
    %c0_57 = arith.constant 0 : index
    %117 = vector.load %arg1[%c640, %c0_57] : memref<1024x128xbf16, #tpu.memory_space<vmem>>, vector<16x15xbf16>
    %118 = arith.truncf %113 : vector<15x64xf32> to vector<15x64xbf16>
    %cst_58 = arith.constant dense<0.000000e+00> : vector<16x64xf32>
    %119 = tpu.matmul %117, %118, %cst_58 {dimension_numbers = #tpu.dot_dimension_numbers<[1], [0], [0], [1], [0, 0, 1, 1], [], []>} : vector<16x15xbf16>, vector<15x64xbf16>, vector<16x64xf32> -> vector<16x64xf32>
    %120 = arith.addf %116, %119 : vector<16x64xf32>
    %c88 = arith.constant 88 : index
    %c0_59 = arith.constant 0 : index
    %121 = vector.load %arg2[%c88, %c0_59] : memref<120x128xf32, #tpu.memory_space<vmem>>, vector<1x64xf32>
    %122 = vector.broadcast %121 : vector<1x64xf32> to vector<16x64xf32>
    %123 = arith.addf %120, %122 : vector<16x64xf32>
    %cst_60 = arith.constant 0.000000e+00 : f32
    %124 = vector.broadcast %cst_60 : f32 to vector<16x64xf32>
    %125 = arith.maximumf %123, %124 : vector<16x64xf32>
    %126 = arith.addf %125, %43 : vector<16x64xf32>
    %c656 = arith.constant 656 : index
    %c0_61 = arith.constant 0 : index
    %127 = vector.load %arg1[%c656, %c0_61] : memref<1024x128xbf16, #tpu.memory_space<vmem>>, vector<64x64xbf16>
    %128 = arith.truncf %126 : vector<16x64xf32> to vector<16x64xbf16>
    %cst_62 = arith.constant dense<0.000000e+00> : vector<16x64xf32>
    %129 = tpu.matmul %128, %127, %cst_62 {dimension_numbers = #tpu.dot_dimension_numbers<[1], [0], [0], [1], [0, 0, 1, 1], [], []>} : vector<16x64xbf16>, vector<64x64xbf16>, vector<16x64xf32> -> vector<16x64xf32>
    %c96 = arith.constant 96 : index
    %c0_63 = arith.constant 0 : index
    %130 = vector.load %arg2[%c96, %c0_63] : memref<120x128xf32, #tpu.memory_space<vmem>>, vector<1x64xf32>
    %131 = vector.broadcast %130 : vector<1x64xf32> to vector<16x64xf32>
    %132 = arith.addf %129, %131 : vector<16x64xf32>
    %c720 = arith.constant 720 : index
    %c0_64 = arith.constant 0 : index
    %133 = vector.load %arg1[%c720, %c0_64] : memref<1024x128xbf16, #tpu.memory_space<vmem>>, vector<64x64xbf16>
    %134 = arith.truncf %126 : vector<16x64xf32> to vector<16x64xbf16>
    %cst_65 = arith.constant dense<0.000000e+00> : vector<16x64xf32>
    %135 = tpu.matmul %134, %133, %cst_65 {dimension_numbers = #tpu.dot_dimension_numbers<[1], [0], [0], [1], [0, 0, 1, 1], [], []>} : vector<16x64xbf16>, vector<64x64xbf16>, vector<16x64xf32> -> vector<16x64xf32>
    %c104 = arith.constant 104 : index
    %c0_66 = arith.constant 0 : index
    %136 = vector.load %arg2[%c104, %c0_66] : memref<120x128xf32, #tpu.memory_space<vmem>>, vector<1x64xf32>
    %137 = vector.broadcast %136 : vector<1x64xf32> to vector<16x64xf32>
    %138 = arith.addf %135, %137 : vector<16x64xf32>
    %139 = arith.negf %138 : vector<16x64xf32>
    %140 = math.exp %139 : vector<16x64xf32>
    %cst_67 = arith.constant 1.000000e+00 : f32
    %141 = vector.broadcast %cst_67 : f32 to vector<16x64xf32>
    %142 = arith.addf %141, %140 : vector<16x64xf32>
    %143 = arith.divf %141, %142 : vector<16x64xf32>
    %144 = arith.mulf %132, %143 : vector<16x64xf32>
    %c848 = arith.constant 848 : index
    %c0_68 = arith.constant 0 : index
    %145 = vector.load %arg1[%c848, %c0_68] : memref<1024x128xbf16, #tpu.memory_space<vmem>>, vector<64x32xbf16>
    %146 = arith.truncf %144 : vector<16x64xf32> to vector<16x64xbf16>
    %cst_69 = arith.constant dense<0.000000e+00> : vector<16x32xf32>
    %147 = tpu.matmul %146, %145, %cst_69 {dimension_numbers = #tpu.dot_dimension_numbers<[1], [0], [0], [1], [0, 0, 1, 1], [], []>} : vector<16x64xbf16>, vector<64x32xbf16>, vector<16x32xf32> -> vector<16x32xf32>
    %c784 = arith.constant 784 : index
    %c0_70 = arith.constant 0 : index
    %148 = vector.load %arg1[%c784, %c0_70] : memref<1024x128xbf16, #tpu.memory_space<vmem>>, vector<64x32xbf16>
    %149 = arith.truncf %144 : vector<16x64xf32> to vector<16x64xbf16>
    %cst_71 = arith.constant dense<0.000000e+00> : vector<16x32xf32>
    %150 = tpu.matmul %149, %148, %cst_71 {dimension_numbers = #tpu.dot_dimension_numbers<[1], [0], [0], [1], [0, 0, 1, 1], [], []>} : vector<16x64xbf16>, vector<64x32xbf16>, vector<16x32xf32> -> vector<16x32xf32>
    %c912 = arith.constant 912 : index
    %c0_72 = arith.constant 0 : index
    %151 = vector.load %arg1[%c912, %c0_72] : memref<1024x128xbf16, #tpu.memory_space<vmem>>, vector<64x32xbf16>
    %152 = arith.truncf %144 : vector<16x64xf32> to vector<16x64xbf16>
    %cst_73 = arith.constant dense<0.000000e+00> : vector<16x32xf32>
    %153 = tpu.matmul %152, %151, %cst_73 {dimension_numbers = #tpu.dot_dimension_numbers<[1], [0], [0], [1], [0, 0, 1, 1], [], []>} : vector<16x64xbf16>, vector<64x32xbf16>, vector<16x32xf32> -> vector<16x32xf32>
    %c992 = arith.constant 992 : index
    %c0_74 = arith.constant 0 : index
    %154 = vector.load %arg1[%c992, %c0_74] : memref<1024x128xbf16, #tpu.memory_space<vmem>>, vector<16x16xbf16>
    %155 = arith.truncf %147 : vector<16x32xf32> to vector<16x32xbf16>
    %cst_75 = arith.constant dense<0.000000e+00> : vector<16x32xf32>
    %156 = tpu.matmul %154, %155, %cst_75 {dimension_numbers = #tpu.dot_dimension_numbers<[1], [0], [0], [1], [0, 0, 1, 1], [], []>} : vector<16x16xbf16>, vector<16x32xbf16>, vector<16x32xf32> -> vector<16x32xf32>
    %c976 = arith.constant 976 : index
    %c0_76 = arith.constant 0 : index
    %157 = vector.load %arg1[%c976, %c0_76] : memref<1024x128xbf16, #tpu.memory_space<vmem>>, vector<16x16xbf16>
    %158 = arith.truncf %150 : vector<16x32xf32> to vector<16x32xbf16>
    %cst_77 = arith.constant dense<0.000000e+00> : vector<16x32xf32>
    %159 = tpu.matmul %157, %158, %cst_77 {dimension_numbers = #tpu.dot_dimension_numbers<[1], [0], [0], [1], [0, 0, 1, 1], [], []>} : vector<16x16xbf16>, vector<16x32xbf16>, vector<16x32xf32> -> vector<16x32xf32>
    %160 = arith.addf %156, %159 : vector<16x32xf32>
    %c1008 = arith.constant 1008 : index
    %c0_78 = arith.constant 0 : index
    %161 = vector.load %arg1[%c1008, %c0_78] : memref<1024x128xbf16, #tpu.memory_space<vmem>>, vector<16x16xbf16>
    %162 = arith.truncf %153 : vector<16x32xf32> to vector<16x32xbf16>
    %cst_79 = arith.constant dense<0.000000e+00> : vector<16x32xf32>
    %163 = tpu.matmul %161, %162, %cst_79 {dimension_numbers = #tpu.dot_dimension_numbers<[1], [0], [0], [1], [0, 0, 1, 1], [], []>} : vector<16x16xbf16>, vector<16x32xbf16>, vector<16x32xf32> -> vector<16x32xf32>
    %164 = arith.addf %160, %163 : vector<16x32xf32>
    %c112_80 = arith.constant 112 : index
    %c0_81 = arith.constant 0 : index
    %165 = vector.load %arg2[%c112_80, %c0_81] : memref<120x128xf32, #tpu.memory_space<vmem>>, vector<1x32xf32>
    %166 = vector.broadcast %165 : vector<1x32xf32> to vector<16x32xf32>
    %167 = arith.addf %164, %166 : vector<16x32xf32>
    %c0_82 = arith.constant 0 : index
    %c0_83 = arith.constant 0 : index
    %168 = vector.load %arg3[%c0_82, %c0_83] : memref<16x32xf32, #tpu.memory_space<vmem>>, vector<16x32xf32>
    tpu.vector_store %arg3[%c0_82, %c0_83], %167 {strides = array<i32>} : memref<16x32xf32, #tpu.memory_space<vmem>>, vector<16x32xf32>,
    return
  }
}

</mosaic_0001>

<bundles_post_ra>
// kernel: tile.44
= control target key start
LH: loop header
LB: loop body
LE: loop exit
PB: predicated region body
PF: predicated region fallthrough
CT: control target
= control target key end

     0   :  { %vm8_vm0 = vcmask 130048   ;;  %s40_s8 = smov 16   ;;  %s41_s9 = smov 32   ;;  %vm14_vm1 = vcmask 523648   ;;  %vm20_vm2 = vcmask 392448   ;;  %vm26_vm3 = vcmask 261248   ;;  %s58_s0 = inlined_call_operand.vmem [shape: f32[4,16], index: 0, kind: input, shape index: {}]   ;;  %s59_s1 = inlined_call_operand.vmem [shape: f32[1,64], index: 1, kind: output, shape index: {}]  }
   0x1   :  { %v5_v0 = vld [vmem:[%s58_s0] sm:$0xf]  ;;  %s39_s0 = smov 48  }
   0x2   :  { %6 = vst [vmem:[#allocation1] sm:$0xf] %v5_v0 }
   0x9   :  { %v11_v1 = vld [vmem:[#allocation1 + $0x3] sm:$0x1]   ;;  %v23_v2 = vld [vmem:[#allocation1 + $0x1] sm:$0x1]   ;;  %v7_v3 = vld [vmem:[#allocation1] sm:$0x1]  }
   0xa   :  { %12 = vrot.lane.b32.xlu0 %v11_v1, %s39_s0  ;;  %24 = vrot.lane.b32.xlu1 %v23_v2, %s40_s8  ;;  %v17_v4 = vld [vmem:[#allocation1 + $0x2] sm:$0x1]   ;;  %9 = vst.msk [vmem:[#allocation0] sm:$0x1] %vm8_vm0, %v7_v3  }
   0xe   :  { %18 = vrot.lane.b32.xlu0 %v17_v4, %s41_s9 }
  0x7c   :  { %v13_v5 = vpop.permute.xlu0 %12   ;;  %v25_v6 = vpop.permute.xlu1 %24  }
  0x7d   :  { %15 = vst.msk [vmem:[#allocation0] sm:$0x1] %vm14_vm1, %v13_v5  }
  0x80   :  { %v19_v7 = vpop.permute.xlu0 %18  }
  0x81   :  { %21 = vst.msk [vmem:[#allocation0] sm:$0x1] %vm20_vm2, %v19_v7  }
  0x82   :  { %27 = vst.msk [vmem:[#allocation0] sm:$0x1] %vm26_vm3, %v25_v6  }
  0x89   :  { %v32_v8 = vld [vmem:[#allocation0] sm:$0x1] }
  0x8a   :  { %35 = vst [vmem:[%s59_s1] sm:$0x1] %v32_v8 }

// kernel: tile.43
= control target key start
LH: loop header
LB: loop body
LE: loop exit
PB: predicated region body
PF: predicated region fallthrough
CT: control target
= control target key end

     0   :  { %s22_s0 = inlined_call_operand.vmem [shape: f32[16], index: 0, kind: input, shape index: {}]   ;;  %s23_s1 = inlined_call_operand.vmem [shape: f32[4,16], index: 1, kind: output, shape index: {}]  }
   0x1   :  { %v4_v0 = vld [vmem:[%s22_s0] ss:$0 sm:$0xff] }
   0x2   :  { %5 = vst [vmem:[%s23_s1] sm:$0xf] %v4_v0 }

// kernel: tile.68
= control target key start
LH: loop header
LB: loop body
LE: loop exit
PB: predicated region body
PF: predicated region fallthrough
CT: control target
= control target key end

     0   :  { %s28_s0 = inlined_call_operand.vmem [shape: f32[2], index: 0, kind: input, shape index: {}]   ;;  %s29_s1 = inlined_call_operand.vmem [shape: f32[16,2], index: 1, kind: output, shape index: {}]  }
   0x1   :  { %v4_v0 = vld [vmem:[%s28_s0] ss:$0 sm:$0xff] }
   0x2   :  { %5 = vst [vmem:[%s29_s1] sm:$0xff] %v4_v0  ;;  %8 = vst [vmem:[%s29_s1 + $0x8] sm:$0xff] %v4_v0 }

// kernel: tile.69
= control target key start
LH: loop header
LB: loop body
LE: loop exit
PB: predicated region body
PF: predicated region fallthrough
CT: control target
= control target key end

     0   :  { %s133_s10 = smov 30   ;;  %s134_s11 = smov 26   ;;  %vm3_vm0 = vcmask 15360   ;;  %vm9_vm1 = vcmask 261360   ;;  %vm15_vm2 = vcmask 244960   ;;  %vm21_vm3 = vcmask 228560   ;;  %s209_s0 = inlined_call_operand.vmem [shape: f32[16,2], index: 0, kind: input, shape index: {}]   ;;  %s210_s1 = inlined_call_operand.vmem [shape: f32[1,32], index: 1, kind: output, shape index: {}]  }
   0x1   :  { %v103_v0 = vld [vmem:[%s209_s0 + $0xf] sm:$0x1]   ;;  %v105_v1 = vld [vmem:[%s209_s0 + $0xd] sm:$0x1]   ;;  %v104_v2 = vld [vmem:[%s209_s0 + $0xe] sm:$0x1]  }
   0x2   :  { %7 = vrot.lane.b32.xlu0 %v103_v0, %s133_s10  ;;  %19 = vrot.lane.b32.xlu1 %v105_v1, %s134_s11  ;;  %v106_v3 = vld [vmem:[%s209_s0 + $0xc] sm:$0x1]   ;;  %s135_s16 = smov 28   ;;  %s136_s17 = smov 24   ;;  %v107_v4 = vld [vmem:[%s209_s0 + $0xb] sm:$0x1]  }
   0x3   :  { %v108_v5 = vld [vmem:[%s209_s0 + $0xa] sm:$0x1]   ;;  %v2_v6 = vld [vmem:[%s209_s0] sm:$0x1]   ;;  %s137_s24 = smov 22   ;;  %s138_s25 = smov 20  }
   0x4   :  { %4 = vst.msk [vmem:[#allocation0] sm:$0x1] %vm3_vm0, %v2_v6   ;;  %v109_v7 = vld [vmem:[%s209_s0 + $0x9] sm:$0x1]   ;;  %v110_v8 = vld [vmem:[%s209_s0 + $0x8] sm:$0x1]  }
   0x5   :  { %s139_s30 = smov 18   ;;  %s140_s2 = smov 16   ;;  %v111_v9 = vld [vmem:[%s209_s0 + $0x7] sm:$0x1]   ;;  %v112_v10 = vld [vmem:[%s209_s0 + $0x6] sm:$0x1]  }
   0x6   :  { %13 = vrot.lane.b32.xlu0 %v104_v2, %s135_s16  ;;  %25 = vrot.lane.b32.xlu1 %v106_v3, %s136_s17  ;;  %s141_s7 = smov 14   ;;  %s142_s8 = smov 12   ;;  %v113_v11 = vld [vmem:[%s209_s0 + $0x5] sm:$0x1]   ;;  %v114_v12 = vld [vmem:[%s209_s0 + $0x4] sm:$0x1]  }
   0x7   :  { %s143_s13 = smov 10   ;;  %s144_s14 = smov 8   ;;  %v115_v13 = vld [vmem:[%s209_s0 + $0x3] sm:$0x1]   ;;  %v116_v14 = vld [vmem:[%s209_s0 + $0x2] sm:$0x1]  }
   0x8   :  { %s145_s19 = smov 6   ;;  %s146_s20 = smov 4   ;;  %v117_v15 = vld [vmem:[%s209_s0 + $0x1] sm:$0x1]   ;;  %vm27_vm4 = vcmask 212160   ;;  %vm33_vm5 = vcmask 195760  }
   0x9   :  { %s147_s0 = smov 2   ;;  %vm39_vm6 = vcmask 179360   ;;  %vm45_vm7 = vcmask 162960   ;;  %vm51_vm8 = vcmask 146560   ;;  %vm57_vm9 = vcmask 130160  }
   0xa   :  { %31 = vrot.lane.b32.xlu0 %v107_v4, %s137_s24  ;;  %37 = vrot.lane.b32.xlu1 %v108_v5, %s138_s25  ;;  %vm63_vm10 = vcmask 113760   ;;  %vm69_vm11 = vcmask 97360   ;;  %vm75_vm12 = vcmask 80960   ;;  %vm81_vm13 = vcmask 64560  }
   0xb   :  { %vm87_vm14 = vcmask 48160   ;;  %vm93_vm15 = vcmask 31760  }
   0xe   :  { %43 = vrot.lane.b32.xlu0 %v109_v7, %s139_s30  ;;  %49 = vrot.lane.b32.xlu1 %v110_v8, %s140_s2 }
  0x12   :  { %55 = vrot.lane.b32.xlu0 %v111_v9, %s141_s7  ;;  %61 = vrot.lane.b32.xlu1 %v112_v10, %s142_s8 }
  0x16   :  { %67 = vrot.lane.b32.xlu0 %v113_v11, %s143_s13  ;;  %73 = vrot.lane.b32.xlu1 %v114_v12, %s144_s14 }
  0x1a   :  { %79 = vrot.lane.b32.xlu0 %v115_v13, %s145_s19  ;;  %85 = vrot.lane.b32.xlu1 %v116_v14, %s146_s20 }
  0x1e   :  { %91 = vrot.lane.b32.xlu0 %v117_v15, %s147_s0 }
  0x74   :  { %v8_v16 = vpop.permute.xlu0 %7   ;;  %v20_v17 = vpop.permute.xlu1 %19  }
  0x75   :  { %10 = vst.msk [vmem:[#allocation0] sm:$0x1] %vm9_vm1, %v8_v16  }
  0x78   :  { %v14_v18 = vpop.permute.xlu0 %13   ;;  %v26_v19 = vpop.permute.xlu1 %25  }
  0x79   :  { %16 = vst.msk [vmem:[#allocation0] sm:$0x1] %vm15_vm2, %v14_v18  }
  0x7a   :  { %22 = vst.msk [vmem:[#allocation0] sm:$0x1] %vm21_vm3, %v20_v17  }
  0x7b   :  { %28 = vst.msk [vmem:[#allocation0] sm:$0x1] %vm27_vm4, %v26_v19  }
  0x7c   :  { %v32_v20 = vpop.permute.xlu0 %31   ;;  %v38_v21 = vpop.permute.xlu1 %37  }
  0x7d   :  { %34 = vst.msk [vmem:[#allocation0] sm:$0x1] %vm33_vm5, %v32_v20  }
  0x7e   :  { %40 = vst.msk [vmem:[#allocation0] sm:$0x1] %vm39_vm6, %v38_v21  }
  0x80   :  { %v44_v22 = vpop.permute.xlu0 %43   ;;  %v50_v23 = vpop.permute.xlu1 %49  }
  0x81   :  { %46 = vst.msk [vmem:[#allocation0] sm:$0x1] %vm45_vm7, %v44_v22  }
  0x82   :  { %52 = vst.msk [vmem:[#allocation0] sm:$0x1] %vm51_vm8, %v50_v23  }
  0x84   :  { %v56_v24 = vpop.permute.xlu0 %55   ;;  %v62_v25 = vpop.permute.xlu1 %61  }
  0x85   :  { %58 = vst.msk [vmem:[#allocation0] sm:$0x1] %vm57_vm9, %v56_v24  }
  0x86   :  { %64 = vst.msk [vmem:[#allocation0] sm:$0x1] %vm63_vm10, %v62_v25  }
  0x88   :  { %v68_v26 = vpop.permute.xlu0 %67   ;;  %v74_v27 = vpop.permute.xlu1 %73  }
  0x89   :  { %70 = vst.msk [vmem:[#allocation0] sm:$0x1] %vm69_vm11, %v68_v26  }
  0x8a   :  { %76 = vst.msk [vmem:[#allocation0] sm:$0x1] %vm75_vm12, %v74_v27  }
  0x8c   :  { %v80_v28 = vpop.permute.xlu0 %79   ;;  %v86_v29 = vpop.permute.xlu1 %85  }
  0x8d   :  { %82 = vst.msk [vmem:[#allocation0] sm:$0x1] %vm81_vm13, %v80_v28  }
  0x8e   :  { %88 = vst.msk [vmem:[#allocation0] sm:$0x1] %vm87_vm14, %v86_v29  }
  0x90   :  { %v92_v30 = vpop.permute.xlu0 %91  }
  0x91   :  { %94 = vst.msk [vmem:[#allocation0] sm:$0x1] %vm93_vm15, %v92_v30  }
  0x98   :  { %v99_v31 = vld [vmem:[#allocation0] sm:$0x1] }
  0x99   :  { %102 = vst [vmem:[%s210_s1] sm:$0x1] %v99_v31 }

// kernel: netwrapper_forward.1
= control target key start
LH: loop header
LB: loop body
LE: loop exit
PB: predicated region body
PF: predicated region fallthrough
CT: control target
= control target key end

     0   :  { %vm46_vm0 = vcmask 1040384   ;;  %vm47_vm1 = vcmask 1041408   ;;  %v2458_v1 = vmov 65535   ;;  %vm33_vm2 = vcmask 23552   ;;  %s2908_s1 = inlined_call_operand.vmem [shape: bf16[1024,128], index: 1, kind: input, shape index: {}]   ;;  %s2909_s0 = inlined_call_operand.vmem [shape: f32[80,32], index: 0, kind: input, shape index: {}]   ;;  %s2910_s2 = inlined_call_operand.vmem [shape: f32[120,128], index: 2, kind: input, shape index: {}]   ;;  %s2911_s3 = inlined_call_operand.vmem [shape: f32[16,32], index: 3, kind: output, shape index: {}]  }
   0x1   :  { %v23_v0 = vld [vmem:[%s2908_s1] sm:$0x3]  ;;  %v48_v2 = vsel %vm46_vm0, 4294967295, %v2458_v1  ;;  %v16_v4 = vld [vmem:[%s2909_s0 + $0x8] sm:$0xff]  ;;  %v17_v7 = vld [vmem:[%s2909_s0 + $0x10] sm:$0xff]  ;;  %v2459_v15 = vmov 0.0  }
   0x2   :  { %v15_v3 = vld [vmem:[%s2909_s0] sm:$0xff]  ;;  %v49_v5 = vsel %vm47_vm1, %v48_v2, 0  ;;  %v18_v8 = vld [vmem:[%s2909_s0 + $0x18] sm:$0xff]  ;;  %v2363_v10 = vld [vmem:[%s2908_s1 + $0x30] ss:$0 sps:$4 sm:$0x33]  }
   0x3   :  { %v24_v6 = vpack.c.bf16 %v16_v4, %v15_v3  ;;  %v51_v9 = vand.u32 %v49_v5, %v23_v0  ;;  %v19_v11 = vld [vmem:[%s2909_s0 + $0x20] sm:$0xff]  ;;  %v20_v12 = vld [vmem:[%s2909_s0 + $0x28] sm:$0xff]  ;;  %v25_v13 = vpack.c.bf16 %v18_v8, %v17_v7  ;;  %v292_v16 = vsel %vm47_vm1, %v2363_v10, 0  ;;  %v21_v18 = vld [vmem:[%s2909_s0 + $0x30] sm:$0xff] }
   0x4   :  { %v26_v14 = vpack.c.bf16 %v20_v12, %v19_v11  ;;  %v2365_v17 = vld [vmem:[%s2908_s1 + $0x20] sm:$0xff]   ;;  %v22_v19 = vld [vmem:[%s2909_s0 + $0x38] sm:$0xff]  ;;  %v2364_v20 = vld [vmem:[%s2908_s1 + $0x28] sm:$0xff]   ;;  %vm287_vm3 = vcmask 162816   ;;  %vm2460_vm4 = vmmov 0   ;;  %vm167_vm5 = vcmask 523264  }
   0x5   :  { %2126 = vmatprep.mubr.msk.bf16.mxu0 %vm33_vm2, %v24_v6  ;;  %2124 = vmatprep.subr.bf16.mxu0 %v51_v9  ;;  %v27_v21 = vpack.c.bf16 %v22_v19, %v21_v18  ;;  %v267_v22 = vld [vmem:[%s2909_s0 + $0x40] sm:$0xff]  ;;  %v268_v23 = vld [vmem:[%s2909_s0 + $0x48] sm:$0xff]  ;;  %v2366_v25 = vld [vmem:[%s2908_s1 + $0x18] sm:$0xff]   ;;  %vm245_vm6 = vcmask 261120   ;;  %vm663_vm7 = vcmask 1046528   ;;  %vm1233_vm8 = vcmask 1047552  }
   0x6   :  { %2125 = vmatpush3.bf16.msra.mxu0 %v51_v9  ;;  %2134 = vmatprep.subr.bf16.mxu1 %v2365_v17  ;;  %v272_v24 = vpack.c.bf16 %v268_v23, %v267_v22  ;;  %v2367_v26 = vld [vmem:[%s2908_s1 + $0x10] sm:$0xff]   ;;  %v2368_v27 = vld [vmem:[%s2908_s1 + $0x8] sm:$0xff]   ;;  %v2373_v30 = vld [vmem:[%s2908_s1 + $0x60] sm:$0xff]   ;;  %vm1229_vm9 = vcmask 121856   ;;  %vm1751_vm10 = vcmask 130048  }
   0x7   :  { %2150 = vmatprep.subr.bf16.mxu0 %v2459_v15  ;;  %2135 = vmatpush3.bf16.msra.mxu1 %v2365_v17  ;;  %v2369_v28 = vld [vmem:[%s2908_s1 + $0x70] sm:$0xff]   ;;  %v2371_v29 = vld [vmem:[%s2908_s1 + $0x68] sm:$0xff]   ;;  %v2375_v31 = vld [vmem:[%s2908_s1 + $0x58] sm:$0xff]  }
   0x8   :  { %2136 = vmatprep.subr.bf16.mxu1 %v2366_v25  ;;  %v1912_v34 = vld [vmem:[%s2910_s2] ss:$0 sm:$0xff]  ;;  %v2370_v48 = vld [vmem:[%s2908_s1 + $0x50] sm:$0xff]   ;;  %v2372_v56 = vld [vmem:[%s2908_s1 + $0x48] sm:$0xff]  }
   0x9   :  { %2127 = vmatmul.mubr.msk.bf16.vlgmr.msra.gmra.mxu0 %vm33_vm2, %v25_v13  ;;  %v1926_v58 = vld [vmem:[%s2910_s2 + $0x10] ss:$0 sm:$0xff]  ;;  %v2374_v3 = vld [vmem:[%s2908_s1 + $0x40] sm:$0xff]   ;;  %v2376_v10 = vld [vmem:[%s2908_s1 + $0x38] sm:$0xff]  }
   0xa   :  { %2151 = vmatpush3.bf16.msra.mxu0 %v292_v16  ;;  %2130 = vmatprep.mubr.msk.bf16.mxu0 %vm33_vm2, %v26_v14  ;;  %v2377_v12 = vld [vmem:[%s2908_s1 + $0x90] sm:$0xff]   ;;  %v2379_v14 = vld [vmem:[%s2908_s1 + $0x88] sm:$0xff]   ;;  %v2381_v17 = vld [vmem:[%s2908_s1 + $0x80] sm:$0xff]  }
   0xb   :  { %2152 = vmatprep.subr.bf16.mxu0 %v2459_v15  ;;  %2137 = vmatpush3.bf16.msra.mxu1 %v2366_v25  ;;  %v2378_v13 = vld [vmem:[%s2908_s1 + $0xb0] sm:$0xff]   ;;  %v2380_v16 = vld [vmem:[%s2908_s1 + $0xa8] sm:$0xff]   ;;  %v2382_v18 = vld [vmem:[%s2908_s1 + $0xa0] sm:$0xff]  }
   0xc   :  { %2138 = vmatprep.subr.bf16.mxu1 %v2367_v26  ;;  %v2383_v19 = vld [vmem:[%s2908_s1 + $0x78] sm:$0xff]   ;;  %v1917_v23 = vld [vmem:[%s2910_s2 + $0x8] ss:$0 sm:$0xff] }
   0xe   :  { %2153 = vmatpush3.bf16.msra.mxu0 %v2364_v20  ;;  %v2384_v20 = vld [vmem:[%s2908_s1 + $0x98] sm:$0xff]  }
   0xf   :  { %2170 = vmatprep.subr.bf16.mxu0 %v2459_v15  ;;  %2139 = vmatpush3.bf16.msra.mxu1 %v2367_v26 }
  0x10   :  { %2140 = vmatprep.subr.bf16.mxu1 %v2368_v27 }
  0x11   :  { %2131 = vmatmul.mubr.msk.bf16.gmra.mxu0 %vm33_vm2, %v27_v21 }
  0x12   :  { %2154 = vmatprep.mubr.msk.bf16.mxu0 %vm2460_vm4, %v2459_v15 }
  0x13   :  { %2141 = vmatpush3.bf16.msra.mxu1 %v2368_v27 }
  0x14   :  { %2158 = vmatprep.subr.bf16.mxu1 %v2459_v15 }
  0x19   :  { %2155 = vmatmul.mubr.msk.bf16.vlgmr.msra.gmra.mxu0 %vm287_vm3, %v272_v24 }
  0x1a   :  { %2178 = vmatprep.mubr.msk.bf16.mxu0 %vm2460_vm4, %v2459_v15  ;;  %2171 = vmatpush3.bf16.msra.mxu0 %v2369_v28 }
  0x1b   :  { %2172 = vmatprep.subr.bf16.mxu0 %v2459_v15 }
  0x1e   :  { %2173 = vmatpush3.bf16.msra.mxu0 %v2371_v29 }
  0x1f   :  { %2174 = vmatprep.subr.bf16.mxu0 %v2459_v15 }
  0x22   :  { %2175 = vmatpush3.bf16.msra.mxu0 %v2373_v30 }
  0x23   :  { %2176 = vmatprep.subr.bf16.mxu0 %v2459_v15 }
  0x26   :  { %2177 = vmatpush3.bf16.msra.mxu0 %v2375_v31 }
  0x27   :  { %2194 = vmatprep.subr.bf16.mxu0 %v2459_v15 }
  0xc9   :  { %v2128_v32 = vpop.f32.mrf.mxu0 }
  0xca   :  { %v96_v38 = vadd.f32 %v2128_v32, %v1912_v34 }
  0xcb   :  { %v87_v33 = vpop.f32.mrf.mxu0 }
  0xcc   :  { %v88_v36 = vadd.f32 %v1912_v34, %v87_v33  ;;  %v120_v45 = vmax.f32 %v96_v38, 0.0 }
  0xcd   :  { %v2129_v35 = vpop.f32.mrf.mxu0 }
  0xce   :  { %v99_v37 = vadd.f32 %v2129_v35, %v1912_v34  ;;  %v118_v43 = vmax.f32 %v88_v36, 0.0  ;;  %v1936_v35 = vld [vmem:[%s2910_s2 + $0x20] ss:$0 sm:$0xff] }
  0xcf   :  { %v90_v39 = vpop.f32.mrf.mxu0 }
  0xd0   :  { %v91_v40 = vadd.f32 %v1912_v34, %v90_v39  ;;  %v121_v41 = vmax.f32 %v99_v37, 0.0 }
  0xd1   :  { %v2132_v42 = vpop.f32.mrf.mxu0 }
  0xd2   :  { %v119_v44 = vmax.f32 %v91_v40, 0.0  ;;  %v135_v49 = vpack.c.bf16 %v121_v41, %v120_v45  ;;  %v112_v53 = vadd.f32 %v2132_v42, %v1912_v34 }
  0xd3   :  { %v103_v46 = vpop.f32.mrf.mxu0 }
  0xd4   :  { %v134_v47 = vpack.c.bf16 %v119_v44, %v118_v43  ;;  %v104_v51 = vadd.f32 %v1912_v34, %v103_v46  ;;  %v124_v62 = vmax.f32 %v112_v53, 0.0 }
  0xd5   :  { %v2133_v50 = vpop.f32.mrf.mxu0 }
  0xd6   :  { %v115_v52 = vadd.f32 %v2133_v50, %v1912_v34  ;;  %2142 = vmatprep.mubr.msk.bf16.mxu1 %vm167_vm5, %v134_v47  ;;  %v122_v60 = vmax.f32 %v104_v51, 0.0 }
  0xd7   :  { %v106_v54 = vpop.f32.mrf.mxu0  ;;  %2143 = vmatmul.mubr.msk.bf16.vlgmr.msra.gmra.mxu1 %vm167_vm5, %v135_v49 }
  0xd8   :  { %v107_v55 = vadd.f32 %v1912_v34, %v106_v54  ;;  %2159 = vmatpush3.bf16.msra.mxu1 %v2370_v48  ;;  %v125_v57 = vmax.f32 %v115_v52, 0.0 }
  0xd9   :  { %v328_v59 = vpop.f32.mrf.mxu0  ;;  %2160 = vmatprep.subr.bf16.mxu1 %v2459_v15 }
  0xda   :  { %v123_v61 = vmax.f32 %v107_v55, 0.0  ;;  %v329_v2 = vadd.f32 %v1926_v58, %v328_v59  ;;  %v137_v4 = vpack.c.bf16 %v125_v57, %v124_v62 }
  0xdb   :  { %v2156_v63 = vpop.f32.mrf.mxu0 }
  0xdc   :  { %v136_v0 = vpack.c.bf16 %v123_v61, %v122_v60  ;;  %2161 = vmatpush3.bf16.msra.mxu1 %v2372_v56  ;;  %v335_v8 = vmax.f32 %v329_v2, 0.0 }
  0xdd   :  { %v331_v5 = vpop.f32.mrf.mxu0  ;;  %2162 = vmatprep.subr.bf16.mxu1 %v2459_v15 }
  0xde   :  { %v332_v6 = vadd.f32 %v1926_v58, %v331_v5  ;;  %2146 = vmatprep.mubr.msk.bf16.mxu1 %vm167_vm5, %v136_v0 }
  0xdf   :  { %2147 = vmatmul.mubr.msk.bf16.gmra.mxu1 %vm167_vm5, %v137_v4  ;;  %v2157_v7 = vpop.f32.mrf.mxu0 }
  0xe0   :  { %v336_v9 = vmax.f32 %v332_v6, 0.0  ;;  %2163 = vmatpush3.bf16.msra.mxu1 %v2374_v3  ;;  %2166 = vmatprep.mubr.msk.bf16.mxu1 %vm2460_vm4, %v2459_v15  ;;  %v1930_v7 = vld [vmem:[%s2910_s2 + $0x18] ss:$0 sm:$0xff] }
  0xe1   :  { %2164 = vmatprep.subr.bf16.mxu1 %v2459_v15 }
  0xe2   :  { %v345_v11 = vpack.c.bf16 %v336_v9, %v335_v8 }
  0xe4   :  { %2165 = vmatpush3.bf16.msra.mxu1 %v2376_v10  ;;  %2179 = vmatmul.mubr.msk.bf16.vlgmr.msra.gmra.mxu0 %vm167_vm5, %v345_v11 }
  0xe5   :  { %2182 = vmatprep.subr.bf16.mxu1 %v2459_v15  ;;  %2202 = vmatprep.mubr.msk.bf16.mxu0 %vm2460_vm4, %v2459_v15 }
  0xe6   :  { %2195 = vmatpush3.bf16.msra.mxu0 %v2378_v13 }
  0xe7   :  { %2167 = vmatmul.mubr.msk.bf16.vlgmr.msra.gmra.mxu1 %vm167_vm5, %v345_v11  ;;  %2196 = vmatprep.subr.bf16.mxu0 %v2459_v15 }
  0xe8   :  { %2190 = vmatprep.mubr.msk.bf16.mxu1 %vm2460_vm4, %v2459_v15  ;;  %2183 = vmatpush3.bf16.msra.mxu1 %v2377_v12 }
  0xe9   :  { %2184 = vmatprep.subr.bf16.mxu1 %v2459_v15 }
  0xea   :  { %2197 = vmatpush3.bf16.msra.mxu0 %v2380_v16  ;;  %v2385_v16 = vld [vmem:[%s2908_s1 + $0xc0] sm:$0xff]  }
  0xeb   :  { %2198 = vmatprep.subr.bf16.mxu0 %v2459_v15 }
  0xec   :  { %2185 = vmatpush3.bf16.msra.mxu1 %v2379_v14 }
  0xed   :  { %2186 = vmatprep.subr.bf16.mxu1 %v2459_v15 }
  0xee   :  { %2199 = vmatpush3.bf16.msra.mxu0 %v2382_v18  ;;  %v2387_v18 = vld [vmem:[%s2908_s1 + $0xb8] sm:$0xff]  }
  0xef   :  { %2200 = vmatprep.subr.bf16.mxu0 %v2459_v15 }
  0xf0   :  { %2187 = vmatpush3.bf16.msra.mxu1 %v2381_v17  ;;  %v2386_v17 = vld [vmem:[%s2908_s1 + $0xd0] sm:$0xff]  }
  0xf1   :  { %2188 = vmatprep.subr.bf16.mxu1 %v2459_v15 }
  0xf2   :  { %2201 = vmatpush3.bf16.msra.mxu0 %v2384_v20 }
  0xf3   :  { %2214 = vmatprep.subr.bf16.mxu0 %v2459_v15 }
  0xf4   :  { %2189 = vmatpush3.bf16.msra.mxu1 %v2383_v19  ;;  %v2388_v19 = vld [vmem:[%s2908_s1 + $0xc8] sm:$0xff]  }
  0xf5   :  { %2206 = vmatprep.subr.bf16.mxu1 %v2459_v15 }
 0x197   :  { %v2144_v21 = vpop.f32.mrf.mxu1 }
 0x198   :  { %v223_v26 = vadd.f32 %v2144_v21, %v1917_v23 }
 0x199   :  { %v214_v22 = vpop.f32.mrf.mxu1 }
 0x19a   :  { %v215_v28 = vadd.f32 %v1917_v23, %v214_v22  ;;  %v248_v31 = vsel %vm245_vm6, %v223_v26, -inf }
 0x19b   :  { %v2145_v24 = vpop.f32.mrf.mxu1 }
 0x19c   :  { %v226_v32 = vadd.f32 %v2145_v24, %v1917_v23  ;;  %v246_v38 = vsel %vm245_vm6, %v215_v28, -inf }
 0x19d   :  { %v217_v25 = vpop.f32.mrf.mxu1 }
 0x19e   :  { %v218_v39 = vadd.f32 %v1917_v23, %v217_v25  ;;  %v249_v46 = vsel %vm245_vm6, %v226_v32, -inf }
 0x19f   :  { %v2148_v27 = vpop.f32.mrf.mxu1 }
 0x1a0   :  { %v239_v29 = vadd.f32 %v2148_v27, %v1917_v23  ;;  %v247_v53 = vsel %vm245_vm6, %v218_v39, -inf }
 0x1a1   :  { %v230_v30 = vpop.f32.mrf.mxu1 }
 0x1a2   :  { %v254_v33 = vsel %vm245_vm6, %v239_v29, -inf  ;;  %v231_v34 = vadd.f32 %v1917_v23, %v230_v30 }
 0x1a3   :  { %v255_v36 = vmax.f32 %v248_v31, %v254_v33  ;;  %v2149_v37 = vpop.f32.mrf.mxu1  ;;  %v1954_v31 = vld [vmem:[%s2910_s2 + $0x28] ss:$0 sm:$0xff] }
 0x1a4   :  { %v250_v40 = vsel %vm245_vm6, %v231_v34, -inf  ;;  %v242_v41 = vadd.f32 %v2149_v37, %v1917_v23  ;;  %v490_v42 = vpop.f32.mrf.mxu0 }
 0x1a5   :  { %v251_v43 = vmax.f32 %v246_v38, %v250_v40  ;;  %v491_v44 = vadd.f32 %v1936_v35, %v490_v42  ;;  %v233_v45 = vpop.f32.mrf.mxu1  ;;  %v2389_v42 = vld [vmem:[%s2908_s1 + $0xf0] sm:$0xff]  }
 0x1a6   :  { %v256_v47 = vsel %vm245_vm6, %v242_v41, -inf  ;;  %v234_v48 = vadd.f32 %v1917_v23, %v233_v45  ;;  %v2180_v49 = vpop.f32.mrf.mxu0  ;;  %v2390_v45 = vld [vmem:[%s2908_s1 + $0xe8] sm:$0xff]  }
 0x1a7   :  { %v257_v50 = vmax.f32 %v249_v46, %v256_v47  ;;  %v1942_v51 = vmul.f32 -1.442695, %v491_v44  ;;  %v412_v52 = vpop.f32.mrf.mxu1  ;;  %v2392_v49 = vld [vmem:[%s2908_s1 + $0xd8] sm:$0xff]  }
 0x1a8   :  { %v252_v54 = vsel %vm245_vm6, %v234_v48, -inf  ;;  %v493_v55 = vpop.f32.mrf.mxu0  ;;  %v413_v9 = vadd.f32 %v1930_v7, %v412_v52  ;;  %v2391_v48 = vld [vmem:[%s2908_s1 + $0xe0] sm:$0xff]  }
 0x1a9   :  { %v259_v56 = vmax.f32 %v255_v36, %v257_v50  ;;  %2426 = vpow2.f32 %v1942_v51  ;;  %v253_v57 = vmax.f32 %v247_v53, %v252_v54  ;;  %v494_v58 = vadd.f32 %v1936_v35, %v493_v55  ;;  %v2168_v59 = vpop.f32.mrf.mxu1  ;;  %v1959_v50 = vld [vmem:[%s2910_s2 + $0x38] ss:$0 sm:$0xff] }
 0x1aa   :  { %v2181_v60 = vpop.f32.mrf.mxu0 }
 0x1ab   :  { %v258_v61 = vmax.f32 %v251_v43, %v253_v57  ;;  %v1943_v62 = vmul.f32 -1.442695, %v494_v58  ;;  %v415_v63 = vpop.f32.mrf.mxu1 }
 0x1ac   :  { %v416_v10 = vadd.f32 %v1930_v7, %v415_v63 }
 0x1ad   :  { %v260_v0 = vmax.f32 %v258_v61, %v259_v56  ;;  %2428 = vpow2.f32 %v1943_v62  ;;  %v2169_v2 = vpop.f32.mrf.mxu1 }
 0x1af   :  { %v261_v20 = vrot.slane %v260_v0, 4 }
 0x1b1   :  { %v262_v23 = vmax.f32 %v260_v0, %v261_v20  ;;  %v2394_v20 = vld [vmem:[%s2908_s1 + $0x110] sm:$0xff]  }
 0x1b3   :  { %v263_v30 = vrot.slane %v262_v23, 2 }
 0x1b5   :  { %v264_v38 = vmax.f32 %v262_v23, %v263_v30  ;;  %v887_v23 = vlaneseq }
 0x1b6   :  { %v2427_v3 = vpop.eup %2426 }
 0x1b7   :  { %v503_v4 = vadd.f32 1.0, %v2427_v3  ;;  %v265_v43 = vrot.slane %v264_v38, 1 }
 0x1b9   :  { %2430 = vrcp.f32 %v503_v4  ;;  %v266_v46 = vmax.f32 %v264_v38, %v265_v43  ;;  %v2399_v43 = vld [vmem:[%s2908_s1 + $0x118] sm:$0xff]  }
 0x1ba   :  { %v2429_v5 = vpop.eup %2428 }
 0x1bb   :  { %v504_v6 = vadd.f32 1.0, %v2429_v5  ;;  %v831_v47 = vpack.c.bf16 %v266_v46, %v266_v46 }
 0x1bd   :  { %2432 = vrcp.f32 %v504_v6 }
 0x1c6   :  { %v2431_v8 = vpop.eup %2430 }
 0x1c7   :  { %v2646_v12 = vmul.f32 %v2431_v8, %v413_v9  ;;  %v1955_v8 = vld [vmem:[%s2910_s2 + $0x30] ss:$0 sm:$0xff] }
 0x1ca   :  { %v2433_v11 = vpop.eup %2432 }
 0x1cb   :  { %v2648_v13 = vmul.f32 %v2433_v11, %v416_v10 }
 0x1cd   :  { %v519_v14 = vpack.c.bf16 %v2648_v13, %v2646_v12 }
 0x1cf   :  { %2191 = vmatmul.mubr.msk.bf16.vlgmr.msra.gmra.mxu1 %vm167_vm5, %v519_v14  ;;  %2203 = vmatmul.mubr.msk.bf16.vlgmr.msra.gmra.mxu0 %vm167_vm5, %v519_v14 }
 0x1d0   :  { %2210 = vmatprep.mubr.msk.bf16.mxu1 %vm2460_vm4, %v2459_v15  ;;  %2218 = vmatprep.mubr.msk.bf16.mxu0 %vm2460_vm4, %v2459_v15 }
 0x1d1   :  { %2207 = vmatpush3.bf16.msra.mxu1 %v2385_v16  ;;  %2215 = vmatpush3.bf16.msra.mxu0 %v2386_v17 }
 0x1d2   :  { %2208 = vmatprep.subr.bf16.mxu1 %v2459_v15  ;;  %2216 = vmatprep.subr.bf16.mxu0 %v2459_v15 }
 0x1d5   :  { %2209 = vmatpush3.bf16.msra.mxu1 %v2387_v18  ;;  %2217 = vmatpush3.bf16.msra.mxu0 %v2388_v19  ;;  %v2393_v19 = vld [vmem:[%s2908_s1 + $0x100] sm:$0xff]  }
 0x1d6   :  { %2222 = vmatprep.subr.bf16.mxu1 %v2459_v15  ;;  %2230 = vmatprep.subr.bf16.mxu0 %v2459_v15 }
 0x28f   :  { %v581_v21 = vpop.f32.mrf.mxu1  ;;  %v654_v22 = vpop.f32.mrf.mxu0 }
 0x290   :  { %v664_v28 = vrot.slane %v654_v22, 1  ;;  %v2396_v22 = vld [vmem:[%s2908_s1 + $0x108] sm:$0xff]  }
 0x291   :  { %v2192_v24 = vpop.f32.mrf.mxu1  ;;  %v2204_v25 = vpop.f32.mrf.mxu0 }
 0x292   :  { %v888_v24 = vshrl.u32 %v887_v23, 7 }
 0x293   :  { %v584_v26 = vpop.f32.mrf.mxu1  ;;  %v657_v27 = vpop.f32.mrf.mxu0 }
 0x294   :  { %v665_v29 = vrot.slane %v657_v27, 1  ;;  %v889_v25 = vsub.s32 0, %v888_v24  ;;  %v2401_v24 = vld [vmem:[%s2908_s1 + $0x140] sm:$0xff]  }
 0x295   :  { %v2193_v32 = vpop.f32.mrf.mxu1  ;;  %v2205_v33 = vpop.f32.mrf.mxu0 }
 0x296   :  { %v666_v34 = vsel %vm663_vm7, %v664_v28, %v665_v29  ;;  %v670_v35 = vadd.f32 %v665_v29, %v584_v26  ;;  %v1971_v28 = vld [vmem:[%s2910_s2 + $0x40] ss:$0 sm:$0xff] }
 0x297   :  { %v669_v36 = vadd.f32 %v666_v34, %v581_v21  ;;  %v2395_v21 = vld [vmem:[%s2908_s1 + $0xf8] sm:$0xff]  }
 0x298   :  { %v677_v37 = vadd.f32 %v1954_v31, %v670_v35 }
 0x299   :  { %v676_v39 = vadd.f32 %v1954_v31, %v669_v36 }
 0x29a   :  { %v679_v40 = vmax.f32 %v677_v37, 0.0 }
 0x29b   :  { %v678_v41 = vmax.f32 %v676_v39, 0.0 }
 0x29d   :  { %v684_v44 = vpack.c.bf16 %v679_v40, %v678_v41  ;;  %v2397_v41 = vld [vmem:[%s2908_s1 + $0x120] sm:$0xff]  }
 0x29f   :  { %2211 = vmatmul.mubr.msk.bf16.vlgmr.msra.gmra.mxu1 %vm245_vm6, %v684_v44  ;;  %2219 = vmatmul.mubr.msk.bf16.vlgmr.msra.gmra.mxu0 %vm245_vm6, %v684_v44  ;;  %v2400_v44 = vld [vmem:[%s2908_s1 + $0x128] sm:$0xff]  }
 0x2a0   :  { %2223 = vmatpush3.bf16.msra.mxu1 %v2389_v42  ;;  %2226 = vmatprep.mubr.msk.bf16.mxu1 %vm2460_vm4, %v2459_v15  ;;  %v2398_v42 = vld [vmem:[%s2908_s1 + $0x130] sm:$0xff]  }
 0x2a1   :  { %2224 = vmatprep.subr.bf16.mxu1 %v2459_v15  ;;  %2234 = vmatprep.mubr.msk.bf16.mxu0 %vm2460_vm4, %v2459_v15 }
 0x2a2   :  { %2231 = vmatpush3.bf16.msra.mxu0 %v2391_v48 }
 0x2a3   :  { %2232 = vmatprep.subr.bf16.mxu0 %v2459_v15 }
 0x2a4   :  { %2225 = vmatpush3.bf16.msra.mxu1 %v2390_v45  ;;  %v1976_v45 = vld [vmem:[%s2910_s2 + $0x50] ss:$0 sm:$0xff] }
 0x2a5   :  { %2238 = vmatprep.subr.bf16.mxu1 %v2459_v15 }
 0x2a6   :  { %2233 = vmatpush3.bf16.msra.mxu0 %v2392_v49 }
 0x2a7   :  { %2227 = vmatmul.mubr.msk.bf16.vlgmr.msra.gmra.mxu1 %vm245_vm6, %v831_v47  ;;  %2246 = vmatprep.subr.bf16.mxu0 %v2459_v15 }
 0x2a8   :  { %2242 = vmatprep.mubr.msk.bf16.mxu1 %vm2460_vm4, %v2459_v15  ;;  %2239 = vmatpush3.bf16.msra.mxu1 %v2393_v19 }
 0x2a9   :  { %2240 = vmatprep.subr.bf16.mxu1 %v2459_v15 }
 0x2ac   :  { %2241 = vmatpush3.bf16.msra.mxu1 %v2395_v21 }
 0x2ad   :  { %2254 = vmatprep.subr.bf16.mxu1 %v2459_v15 }
 0x35f   :  { %v739_v51 = vpop.f32.mrf.mxu1  ;;  %v801_v52 = vpop.f32.mrf.mxu0 }
 0x360   :  { %v802_v53 = vadd.f32 %v1959_v50, %v801_v52  ;;  %v740_v10 = vadd.f32 %v1955_v8, %v739_v51 }
 0x361   :  { %v2212_v54 = vpop.f32.mrf.mxu1  ;;  %v2220_v55 = vpop.f32.mrf.mxu0 }
 0x362   :  { %v1963_v56 = vmul.f32 -1.442695, %v802_v53 }
 0x363   :  { %v742_v57 = vpop.f32.mrf.mxu1  ;;  %v804_v58 = vpop.f32.mrf.mxu0 }
 0x364   :  { %2434 = vpow2.f32 %v1963_v56  ;;  %v805_v59 = vadd.f32 %v1959_v50, %v804_v58  ;;  %v743_v11 = vadd.f32 %v1955_v8, %v742_v57 }
 0x365   :  { %v2213_v60 = vpop.f32.mrf.mxu1  ;;  %v2221_v61 = vpop.f32.mrf.mxu0 }
 0x366   :  { %v1964_v62 = vmul.f32 -1.442695, %v805_v59 }
 0x367   :  { %v881_v63 = vpop.f32.mrf.mxu1 }
 0x368   :  { %2436 = vpow2.f32 %v1964_v62  ;;  %v890_v26 = vrot.slane %v881_v63, %v889_v25  ;;  %v1972_v62 = vld [vmem:[%s2910_s2 + $0x48] ss:$0 sm:$0xff]  ;;  %v2402_v25 = vld [vmem:[%s2908_s1 + $0x138] sm:$0xff]  }
 0x369   :  { %v2228_v0 = vpop.f32.mrf.mxu1 }
 0x36b   :  { %v884_v2 = vpop.f32.mrf.mxu1 }
 0x36d   :  { %v2229_v3 = vpop.f32.mrf.mxu1 }
 0x371   :  { %v2435_v4 = vpop.eup %2434 }
 0x372   :  { %v814_v5 = vadd.f32 1.0, %v2435_v4 }
 0x374   :  { %2438 = vrcp.f32 %v814_v5 }
 0x375   :  { %v2437_v6 = vpop.eup %2436 }
 0x376   :  { %v815_v7 = vadd.f32 1.0, %v2437_v6 }
 0x378   :  { %2440 = vrcp.f32 %v815_v7 }
 0x381   :  { %v2439_v9 = vpop.eup %2438 }
 0x382   :  { %v820_v16 = vmul.f32 %v2439_v9, %v740_v10  ;;  %v1234_v9 = vsel %vm663_vm7, 4294967295, %v2458_v1  ;;  %v2403_v1 = vld [vmem:[%s2908_s1 + $0x160] sm:$0xff]  }
 0x385   :  { %v2441_v14 = vpop.eup %2440 }
 0x386   :  { %v821_v17 = vmul.f32 %v2441_v14, %v743_v11 }
 0x388   :  { %v826_v18 = vpack.c.bf16 %v821_v17, %v820_v16 }
 0x38a   :  { %2235 = vmatmul.mubr.msk.bf16.vlgmr.msra.gmra.mxu0 %vm245_vm6, %v826_v18 }
 0x38b   :  { %2250 = vmatprep.mubr.msk.bf16.mxu0 %vm2460_vm4, %v2459_v15  ;;  %2247 = vmatpush3.bf16.msra.mxu0 %v2394_v20 }
 0x38c   :  { %2248 = vmatprep.subr.bf16.mxu0 %v2459_v15 }
 0x38f   :  { %2249 = vmatpush3.bf16.msra.mxu0 %v2396_v22 }
 0x390   :  { %2262 = vmatprep.subr.bf16.mxu0 %v2459_v15 }
 0x44a   :  { %v940_v27 = vpop.f32.mrf.mxu0 }
 0x44b   :  { %v941_v29 = vadd.f32 %v940_v27, %v890_v26  ;;  %v2405_v27 = vld [vmem:[%s2908_s1 + $0x158] sm:$0xff]  }
 0x44c   :  { %v2236_v30 = vpop.f32.mrf.mxu0 }
 0x44d   :  { %v952_v31 = vadd.f32 %v1971_v28, %v941_v29  ;;  %v2407_v29 = vld [vmem:[%s2908_s1 + $0x150] sm:$0xff]  }
 0x44e   :  { %v943_v32 = vpop.f32.mrf.mxu0  ;;  %v2408_v30 = vld [vmem:[%s2908_s1 + $0x170] sm:$0xff]  }
 0x44f   :  { %v944_v33 = vadd.f32 %v943_v32, %v890_v26  ;;  %v954_v35 = vmax.f32 %v952_v31, 0.0  ;;  %v2404_v26 = vld [vmem:[%s2908_s1 + $0x180] sm:$0xff]   ;;  %v2409_v31 = vld [vmem:[%s2908_s1 + $0x148] sm:$0xff]  }
 0x450   :  { %v2237_v34 = vpop.f32.mrf.mxu0  ;;  %v2410_v32 = vld [vmem:[%s2908_s1 + $0x168] sm:$0xff]  }
 0x451   :  { %v953_v36 = vadd.f32 %v1971_v28, %v944_v33  ;;  %v956_v38 = vadd.f32 %v954_v35, %v820_v16  ;;  %v1235_v16 = vsel %vm1233_vm8, %v1234_v9, 0  ;;  %v2406_v28 = vld [vmem:[%s2908_s1 + $0x178] sm:$0xff]  }
 0x452   :  { %v1992_v35 = vld [vmem:[%s2910_s2 + $0x58] ss:$0 sm:$0xff] }
 0x453   :  { %v955_v37 = vmax.f32 %v953_v36, 0.0 }
 0x455   :  { %v957_v39 = vadd.f32 %v955_v37, %v821_v17 }
 0x457   :  { %v962_v40 = vpack.c.bf16 %v957_v39, %v956_v38 }
 0x459   :  { %2243 = vmatmul.mubr.msk.bf16.vlgmr.msra.gmra.mxu1 %vm245_vm6, %v962_v40  ;;  %2251 = vmatmul.mubr.msk.bf16.vlgmr.msra.gmra.mxu0 %vm245_vm6, %v962_v40 }
 0x45a   :  { %2258 = vmatprep.mubr.msk.bf16.mxu1 %vm2460_vm4, %v2459_v15  ;;  %2266 = vmatprep.mubr.msk.bf16.mxu0 %vm2460_vm4, %v2459_v15 }
 0x45b   :  { %2255 = vmatpush3.bf16.msra.mxu1 %v2397_v41  ;;  %2263 = vmatpush3.bf16.msra.mxu0 %v2398_v42 }
 0x45c   :  { %2256 = vmatprep.subr.bf16.mxu1 %v2459_v15  ;;  %2264 = vmatprep.subr.bf16.mxu0 %v2459_v15 }
 0x45f   :  { %2257 = vmatpush3.bf16.msra.mxu1 %v2399_v43  ;;  %2265 = vmatpush3.bf16.msra.mxu0 %v2400_v44 }
 0x460   :  { %2270 = vmatprep.subr.bf16.mxu1 %v2459_v15  ;;  %2276 = vmatprep.subr.bf16.mxu0 %v2459_v15 }
 0x519   :  { %v1017_v46 = vpop.f32.mrf.mxu1  ;;  %v1079_v47 = vpop.f32.mrf.mxu0 }
 0x51a   :  { %v1080_v48 = vadd.f32 %v1976_v45, %v1079_v47  ;;  %v1018_v0 = vadd.f32 %v1972_v62, %v1017_v46 }
 0x51b   :  { %v2244_v49 = vpop.f32.mrf.mxu1  ;;  %v2252_v50 = vpop.f32.mrf.mxu0 }
 0x51c   :  { %v1980_v51 = vmul.f32 -1.442695, %v1080_v48 }
 0x51d   :  { %v1020_v52 = vpop.f32.mrf.mxu1  ;;  %v1082_v53 = vpop.f32.mrf.mxu0 }
 0x51e   :  { %2442 = vpow2.f32 %v1980_v51  ;;  %v1083_v54 = vadd.f32 %v1976_v45, %v1082_v53  ;;  %v1021_v2 = vadd.f32 %v1972_v62, %v1020_v52  ;;  %v2411_v51 = vld [vmem:[%s2908_s1 + $0x1c0] sm:$0xff]   ;;  %v2414_v52 = vld [vmem:[%s2908_s1 + $0x198] sm:$0xff]   ;;  %v2415_v53 = vld [vmem:[%s2908_s1 + $0x1b0] sm:$0xff]  }
 0x51f   :  { %v2245_v55 = vpop.f32.mrf.mxu1  ;;  %v2253_v56 = vpop.f32.mrf.mxu0 }
 0x520   :  { %v1981_v57 = vmul.f32 -1.442695, %v1083_v54  ;;  %v2416_v54 = vld [vmem:[%s2908_s1 + $0x190] sm:$0xff]   ;;  %v2417_v55 = vld [vmem:[%s2908_s1 + $0x1a8] sm:$0xff]  }
 0x521   :  { %v2418_v56 = vld [vmem:[%s2908_s1 + $0x188] sm:$0xff]  }
 0x522   :  { %2444 = vpow2.f32 %v1981_v57  ;;  %v1999_v57 = vld [vmem:[%s2910_s2 + $0x68] ss:$0 sm:$0xff] }
 0x52b   :  { %v2443_v58 = vpop.eup %2442 }
 0x52c   :  { %v1092_v59 = vadd.f32 1.0, %v2443_v58 }
 0x52e   :  { %2446 = vrcp.f32 %v1092_v59 }
 0x52f   :  { %v2445_v60 = vpop.eup %2444 }
 0x530   :  { %v1093_v61 = vadd.f32 1.0, %v2445_v60 }
 0x532   :  { %2448 = vrcp.f32 %v1093_v61 }
 0x53b   :  { %v2447_v63 = vpop.eup %2446 }
 0x53c   :  { %v1098_v4 = vmul.f32 %v2447_v63, %v1018_v0 }
 0x53f   :  { %v2449_v3 = vpop.eup %2448 }
 0x540   :  { %v1099_v5 = vmul.f32 %v2449_v3, %v1021_v2 }
 0x542   :  { %v1104_v6 = vpack.c.bf16 %v1099_v5, %v1098_v4 }
 0x544   :  { %2259 = vmatmul.mubr.msk.bf16.vlgmr.msra.gmra.mxu1 %vm245_vm6, %v1104_v6  ;;  %2267 = vmatmul.mubr.msk.bf16.vlgmr.msra.gmra.mxu0 %vm245_vm6, %v1104_v6 }
 0x545   :  { %2272 = vmatprep.mubr.msk.bf16.mxu1 %vm2460_vm4, %v2459_v15  ;;  %2278 = vmatprep.mubr.msk.bf16.mxu0 %vm2460_vm4, %v2459_v15 }
 0x604   :  { %v1154_v7 = vpop.f32.mrf.mxu1  ;;  %v1211_v8 = vpop.f32.mrf.mxu0 }
 0x606   :  { %v2260_v10 = vpop.f32.mrf.mxu1  ;;  %v2268_v11 = vpop.f32.mrf.mxu0 }
 0x607   :  { %v1993_v11 = vld [vmem:[%s2910_s2 + $0x60] ss:$0 sm:$0xff] }
 0x608   :  { %v1157_v14 = vpop.f32.mrf.mxu1  ;;  %v1214_v17 = vpop.f32.mrf.mxu0 }
 0x609   :  { %v1220_v18 = vpack.c.bf16 %v1157_v14, %v1154_v7  ;;  %v1223_v19 = vpack.c.bf16 %v1214_v17, %v1211_v8 }
 0x60a   :  { %v2261_v20 = vpop.f32.mrf.mxu1  ;;  %v2269_v21 = vpop.f32.mrf.mxu0 }
 0x60b   :  { %v1289_v22 = vand.u32 %v1235_v16, %v1220_v18  ;;  %v1237_v23 = vand.u32 %v1235_v16, %v1223_v19  ;;  %v2419_v21 = vld [vmem:[%s2908_s1 + $0x1e0] sm:$0xff]  }
 0x60d   :  { %2271 = vmatpush3.bf16.msra.mxu1 %v1237_v23  ;;  %2277 = vmatpush3.bf16.msra.mxu0 %v1289_v22  ;;  %v2420_v23 = vld [vmem:[%s2908_s1 + $0x1d8] sm:$0xff]  }
 0x60e   :  { %2282 = vmatprep.subr.bf16.mxu1 %v2459_v15  ;;  %2294 = vmatprep.subr.bf16.mxu0 %v2459_v15 }
 0x610   :  { %2273 = vmatmul.mubr.msk.bf16.vlgmr.msra.gmra.mxu1 %vm1229_vm9, %v2401_v24  ;;  %2279 = vmatmul.mubr.msk.bf16.vlgmr.msra.gmra.mxu0 %vm1229_vm9, %v2402_v25  ;;  %v2421_v24 = vld [vmem:[%s2908_s1 + $0x1d0] sm:$0xff]   ;;  %v2422_v25 = vld [vmem:[%s2908_s1 + $0x1c8] sm:$0xff]  }
 0x611   :  { %2290 = vmatprep.mubr.msk.bf16.mxu1 %vm2460_vm4, %v2459_v15  ;;  %2302 = vmatprep.mubr.msk.bf16.mxu0 %vm2460_vm4, %v2459_v15 }
 0x612   :  { %2283 = vmatpush3.bf16.msra.mxu1 %v2403_v1  ;;  %2295 = vmatpush3.bf16.msra.mxu0 %v2404_v26 }
 0x613   :  { %2284 = vmatprep.subr.bf16.mxu1 %v2459_v15  ;;  %2296 = vmatprep.subr.bf16.mxu0 %v2459_v15 }
 0x616   :  { %2285 = vmatpush3.bf16.msra.mxu1 %v2405_v27  ;;  %2297 = vmatpush3.bf16.msra.mxu0 %v2406_v28 }
 0x617   :  { %2286 = vmatprep.subr.bf16.mxu1 %v2459_v15  ;;  %2298 = vmatprep.subr.bf16.mxu0 %v2459_v15 }
 0x61a   :  { %2287 = vmatpush3.bf16.msra.mxu1 %v2407_v29  ;;  %2299 = vmatpush3.bf16.msra.mxu0 %v2408_v30 }
 0x61b   :  { %2288 = vmatprep.subr.bf16.mxu1 %v2459_v15  ;;  %2300 = vmatprep.subr.bf16.mxu0 %v2459_v15 }
 0x61e   :  { %2289 = vmatpush3.bf16.msra.mxu1 %v2409_v31  ;;  %2301 = vmatpush3.bf16.msra.mxu0 %v2410_v32 }
 0x61f   :  { %2306 = vmatprep.subr.bf16.mxu1 %v2459_v15  ;;  %2318 = vmatprep.subr.bf16.mxu0 %v2459_v15 }
 0x6d0   :  { %v1273_v33 = vpop.f32.mrf.mxu1  ;;  %v1325_v34 = vpop.f32.mrf.mxu0 }
 0x6d1   :  { %v1326_v36 = vadd.f32 %v1325_v34, %v1273_v33  ;;  %v2423_v34 = vld [vmem:[%s2908_s1 + $0x1e8] sm:$0xff]  }
 0x6d2   :  { %v2274_v37 = vpop.f32.mrf.mxu1  ;;  %v2280_v38 = vpop.f32.mrf.mxu0 }
 0x6d3   :  { %v1337_v39 = vadd.f32 %v1992_v35, %v1326_v36  ;;  %v2424_v36 = vld [vmem:[%s2908_s1 + $0x1f0] sm:$0xff]  }
 0x6d4   :  { %v1276_v40 = vpop.f32.mrf.mxu1  ;;  %v1328_v41 = vpop.f32.mrf.mxu0 }
 0x6d5   :  { %v1329_v42 = vadd.f32 %v1328_v41, %v1276_v40  ;;  %v1339_v45 = vmax.f32 %v1337_v39, 0.0 }
 0x6d6   :  { %v2275_v43 = vpop.f32.mrf.mxu1  ;;  %v2281_v44 = vpop.f32.mrf.mxu0 }
 0x6d7   :  { %v1338_v46 = vadd.f32 %v1992_v35, %v1329_v42  ;;  %v1341_v48 = vadd.f32 %v1339_v45, %v2646_v12  ;;  %v2412_v12 = vld [vmem:[%s2908_s1 + $0x1a0] sm:$0xff]   ;;  %v2425_v42 = vld [vmem:[%s2908_s1 + $0x1f8] sm:$0xff]  }
 0x6d9   :  { %v1340_v47 = vmax.f32 %v1338_v46, 0.0 }
 0x6db   :  { %v1342_v49 = vadd.f32 %v1340_v47, %v2648_v13  ;;  %v2413_v13 = vld [vmem:[%s2908_s1 + $0x1b8] sm:$0xff]  }
 0x6dd   :  { %v1351_v50 = vpack.c.bf16 %v1342_v49, %v1341_v48 }
 0x6df   :  { %2291 = vmatmul.mubr.msk.bf16.vlgmr.msra.gmra.mxu1 %vm167_vm5, %v1351_v50  ;;  %2303 = vmatmul.mubr.msk.bf16.vlgmr.msra.gmra.mxu0 %vm167_vm5, %v1351_v50 }
 0x6e0   :  { %2314 = vmatprep.mubr.msk.bf16.mxu1 %vm2460_vm4, %v2459_v15  ;;  %2326 = vmatprep.mubr.msk.bf16.mxu0 %vm2460_vm4, %v2459_v15 }
 0x6e1   :  { %2307 = vmatpush3.bf16.msra.mxu1 %v2411_v51  ;;  %2319 = vmatpush3.bf16.msra.mxu0 %v2412_v12  ;;  %v2028_v12 = vld [vmem:[%s2910_s2 + $0x70] ss:$0 sm:$0xff] }
 0x6e2   :  { %2308 = vmatprep.subr.bf16.mxu1 %v2459_v15  ;;  %2320 = vmatprep.subr.bf16.mxu0 %v2459_v15 }
 0x6e5   :  { %2309 = vmatpush3.bf16.msra.mxu1 %v2413_v13  ;;  %2321 = vmatpush3.bf16.msra.mxu0 %v2414_v52 }
 0x6e6   :  { %2310 = vmatprep.subr.bf16.mxu1 %v2459_v15  ;;  %2322 = vmatprep.subr.bf16.mxu0 %v2459_v15 }
 0x6e9   :  { %2311 = vmatpush3.bf16.msra.mxu1 %v2415_v53  ;;  %2323 = vmatpush3.bf16.msra.mxu0 %v2416_v54 }
 0x6ea   :  { %2312 = vmatprep.subr.bf16.mxu1 %v2459_v15  ;;  %2324 = vmatprep.subr.bf16.mxu0 %v2459_v15 }
 0x6ed   :  { %2313 = vmatpush3.bf16.msra.mxu1 %v2417_v55  ;;  %2325 = vmatpush3.bf16.msra.mxu0 %v2418_v56 }
 0x6ee   :  { %2330 = vmatprep.subr.bf16.mxu1 %v2459_v15  ;;  %2342 = vmatprep.subr.bf16.mxu0 %v2459_v15 }
 0x79f   :  { %v1418_v58 = vpop.f32.mrf.mxu1  ;;  %v1496_v59 = vpop.f32.mrf.mxu0 }
 0x7a0   :  { %v1497_v60 = vadd.f32 %v1999_v57, %v1496_v59  ;;  %v1419_v16 = vadd.f32 %v1993_v11, %v1418_v58 }
 0x7a1   :  { %v2292_v61 = vpop.f32.mrf.mxu1  ;;  %v2304_v62 = vpop.f32.mrf.mxu0 }
 0x7a2   :  { %v2005_v63 = vmul.f32 -1.442695, %v1497_v60 }
 0x7a3   :  { %v1421_v0 = vpop.f32.mrf.mxu1  ;;  %v1499_v2 = vpop.f32.mrf.mxu0 }
 0x7a4   :  { %2450 = vpow2.f32 %v2005_v63  ;;  %v1500_v3 = vadd.f32 %v1999_v57, %v1499_v2  ;;  %v1422_v17 = vadd.f32 %v1993_v11, %v1421_v0 }
 0x7a5   :  { %v2293_v4 = vpop.f32.mrf.mxu1  ;;  %v2305_v5 = vpop.f32.mrf.mxu0 }
 0x7a6   :  { %v2006_v6 = vmul.f32 -1.442695, %v1500_v3 }
 0x7a8   :  { %2452 = vpow2.f32 %v2006_v6 }
 0x7b1   :  { %v2451_v7 = vpop.eup %2450 }
 0x7b2   :  { %v1509_v8 = vadd.f32 1.0, %v2451_v7 }
 0x7b4   :  { %2454 = vrcp.f32 %v1509_v8 }
 0x7b5   :  { %v2453_v9 = vpop.eup %2452 }
 0x7b6   :  { %v1510_v10 = vadd.f32 1.0, %v2453_v9 }
 0x7b8   :  { %2456 = vrcp.f32 %v1510_v10 }
 0x7c1   :  { %v2455_v14 = vpop.eup %2454 }
 0x7c2   :  { %v1515_v19 = vmul.f32 %v2455_v14, %v1419_v16 }
 0x7c5   :  { %v2457_v18 = vpop.eup %2456 }
 0x7c6   :  { %v1516_v20 = vmul.f32 %v2457_v18, %v1422_v17 }
 0x7c8   :  { %v1525_v22 = vpack.c.bf16 %v1516_v20, %v1515_v19 }
 0x7ca   :  { %2315 = vmatmul.mubr.msk.bf16.vlgmr.msra.gmra.mxu1 %vm167_vm5, %v1525_v22  ;;  %2327 = vmatmul.mubr.msk.bf16.vlgmr.msra.gmra.mxu0 %vm167_vm5, %v1525_v22 }
 0x7cb   :  { %2331 = vmatpush3.bf16.msra.mxu1 %v2419_v21  ;;  %2338 = vmatprep.mubr.msk.bf16.mxu1 %vm2460_vm4, %v2459_v15 }
 0x7cc   :  { %2332 = vmatprep.subr.bf16.mxu1 %v2459_v15  ;;  %2344 = vmatprep.mubr.msk.bf16.mxu0 %vm2460_vm4, %v2459_v15 }
 0x7cf   :  { %2333 = vmatpush3.bf16.msra.mxu1 %v2420_v23 }
 0x7d0   :  { %2334 = vmatprep.subr.bf16.mxu1 %v2459_v15 }
 0x7d3   :  { %2335 = vmatpush3.bf16.msra.mxu1 %v2421_v24 }
 0x7d4   :  { %2336 = vmatprep.subr.bf16.mxu1 %v2459_v15 }
 0x7d7   :  { %2337 = vmatpush3.bf16.msra.mxu1 %v2422_v25 }
 0x7d8   :  { %2354 = vmatprep.subr.bf16.mxu1 %v2459_v15 }
 0x7da   :  { %2339 = vmatmul.mubr.msk.bf16.vlgmr.msra.gmra.mxu1 %vm167_vm5, %v1525_v22 }
 0x7db   :  { %2356 = vmatprep.mubr.msk.bf16.mxu1 %vm2460_vm4, %v2459_v15 }
 0x88a   :  { %v1587_v1 = vpop.f32.mrf.mxu1  ;;  %v1660_v26 = vpop.f32.mrf.mxu0 }
 0x88c   :  { %v2316_v27 = vpop.f32.mrf.mxu1  ;;  %v2328_v28 = vpop.f32.mrf.mxu0 }
 0x88e   :  { %v1590_v29 = vpop.f32.mrf.mxu1  ;;  %v1663_v30 = vpop.f32.mrf.mxu0 }
 0x88f   :  { %v1745_v31 = vpack.c.bf16 %v1663_v30, %v1660_v26  ;;  %v1742_v35 = vpack.c.bf16 %v1590_v29, %v1587_v1 }
 0x890   :  { %v2317_v32 = vpop.f32.mrf.mxu1  ;;  %v2329_v33 = vpop.f32.mrf.mxu0 }
 0x891   :  { %2343 = vmatpush3.bf16.msra.mxu0 %v1745_v31 }
 0x892   :  { %2348 = vmatprep.subr.bf16.mxu0 %v2459_v15 }
 0x894   :  { %2345 = vmatmul.mubr.msk.bf16.vlgmr.msra.gmra.mxu0 %vm1751_vm10, %v2423_v34 }
 0x895   :  { %2349 = vmatpush3.bf16.msra.mxu0 %v1742_v35  ;;  %2350 = vmatprep.mubr.msk.bf16.mxu0 %vm2460_vm4, %v2459_v15 }
 0x89a   :  { %v1733_v37 = vpop.f32.mrf.mxu1 }
 0x89c   :  { %v2340_v38 = vpop.f32.mrf.mxu1  ;;  %2351 = vmatmul.mubr.msk.bf16.vlgmr.msra.gmra.mxu0 %vm1751_vm10, %v2424_v36 }
 0x89e   :  { %v1736_v39 = vpop.f32.mrf.mxu1 }
 0x89f   :  { %v1847_v40 = vpack.c.bf16 %v1736_v39, %v1733_v37 }
 0x8a0   :  { %v2341_v41 = vpop.f32.mrf.mxu1 }
 0x8a1   :  { %2355 = vmatpush3.bf16.msra.mxu1 %v1847_v40 }
 0x8a4   :  { %2357 = vmatmul.mubr.msk.bf16.vlgmr.msra.gmra.mxu1 %vm1751_vm10, %v2425_v42 }
 0x954   :  { %v1789_v43 = vpop.f32.mrf.mxu0 }
 0x956   :  { %v2346_v44 = vpop.f32.mrf.mxu0 }
 0x958   :  { %v1792_v45 = vpop.f32.mrf.mxu0 }
 0x95a   :  { %v2347_v15 = vpop.f32.mrf.mxu0 }
 0x95c   :  { %v1838_v46 = vpop.f32.mrf.mxu0 }
 0x95d   :  { %v1839_v50 = vadd.f32 %v1838_v46, %v1789_v43 }
 0x95e   :  { %v2352_v47 = vpop.f32.mrf.mxu0 }
 0x960   :  { %v1841_v48 = vpop.f32.mrf.mxu0 }
 0x961   :  { %v1842_v53 = vadd.f32 %v1841_v48, %v1792_v45 }
 0x962   :  { %v2353_v49 = vpop.f32.mrf.mxu0 }
 0x964   :  { %v1890_v51 = vpop.f32.mrf.mxu1 }
 0x965   :  { %v1897_v13 = vadd.f32 %v1890_v51, %v1839_v50 }
 0x966   :  { %v2358_v52 = vpop.f32.mrf.mxu1 }
 0x967   :  { %v1904_v54 = vadd.f32 %v2028_v12, %v1897_v13 }
 0x968   :  { %v1893_v55 = vpop.f32.mrf.mxu1 }
 0x969   :  { %1906 = vst.msk [vmem:[%s2911_s3] sm:$0xff] %vm245_vm6, %v1904_v54  ;;  %v1898_v56 = vadd.f32 %v1893_v55, %v1842_v53 }
 0x96a   :  { %v2359_v57 = vpop.f32.mrf.mxu1 }
 0x96b   :  { %v1905_v58 = vadd.f32 %v2028_v12, %v1898_v56 }
 0x96d   :  { %1907 = vst.msk [vmem:[%s2911_s3 + $0x8] sm:$0xff] %vm245_vm6, %v1905_v58 }

</bundles_post_ra>
